<compile_context>
chip_gen: v5e
topology: v5e:2x2
jax: 0.10.0
libtpu: 0.0.40
codegen_flags: <defaults>
</compile_context>

<pallas_src>
import numpy as np
import jax
import jax.numpy as jnp
from jax.experimental import pallas as pl
from jax.experimental.pallas import tpu as pltpu


# ----------------------------------------------------------------------------
# Pallas kernel: multi-layer LSTM (zero init state) + final-step Linear head.
# Whole recurrence runs in one grid-less kernel invocation.
# ----------------------------------------------------------------------------
def make_lstm_kernel(num_layers, seq_len, batch, hidden_dim):
    H = hidden_dim
    L = num_layers

    def kernel(*refs):
        # refs layout:
        #   x_flat,                    (seq*batch, in_d)   bf16
        #   w_ih0_T, b0,               (in_d, 4H) bf16 / (1, 4H) f32
        #   [w_cat_l, b_{l+1}] * (L-1) (H, 8H) bf16 / (1, 4H) f32
        #   w_hh_last,                 (H, 4H) bf16
        #   fc_w_pad, fc_b_pad,        (H, P) bf16 / (1, P) f32
        #   out_ref,                   (batch, P) f32
        #   gate_buf (scratch),        (seq*batch, 4H) f32
        x_ref = refs[0]
        w_ih0_ref = refs[1]
        b0_ref = refs[2]
        cat_refs = refs[3:3 + 2 * (L - 1)]
        w_hh_last_ref = refs[3 + 2 * (L - 1)]
        fc_w_ref = refs[4 + 2 * (L - 1)]
        fc_b_ref = refs[5 + 2 * (L - 1)]
        out_ref = refs[6 + 2 * (L - 1)]
        gate_buf = refs[7 + 2 * (L - 1)]

        # Hoisted layer-0 projection over ALL timesteps, bias folded in,
        # lane-dense 128-wide unmasked stores.
        gate_buf[...] = (
            jnp.dot(x_ref[...], w_ih0_ref[...],
                    preferred_element_type=jnp.float32) + b0_ref[...])

        # Weights/biases are small enough to stay resident in vregs across the
        # unrolled wavefront (w_cat: 4 vregs bf16, w_hh_last: 2, fc: 2).
        w_cat = [cat_refs[2 * l][...] for l in range(L - 1)]        # (H, 8H)
        b_next = [cat_refs[2 * l + 1][...] for l in range(L - 1)]   # (1, 4H)
        w_hh_last = w_hh_last_ref[...]                              # (H, 4H)

        h = [None] * L          # per-layer hidden state (f32, (batch, H))
        c = [None] * L          # per-layer cell state   (f32, (batch, H))
        rec_pre = [None] * L    # h_{l,t-1} @ W_hh_l       (f32, (batch, 4H))
        inp_pre = [None] * L    # h_{l-1,t} @ W_ih_l + b_l (f32, (batch, 4H))

        # Wavefront over diagonals: stage s runs layer l at timestep t = s - l.
        for s in range(seq_len + L - 1):
            lo = max(0, s - seq_len + 1)
            hi = min(L - 1, s)
            # Process layers in DECREASING order so layer l consumes
            # inp_pre[l] (written at stage s-1 by layer l-1) before layer l-1
            # overwrites it with the value destined for stage s+1.
            for l in range(hi, lo - 1, -1):
                t = s - l

                if l == 0:
                    g_in = gate_buf[pl.ds(t * batch, batch), :]   # bias folded
                else:
                    g_in = inp_pre[l]                             # bias folded
                gates = g_in if t == 0 else g_in + rec_pre[l]

                # Gate columns pre-ordered [i, f, o, g]:
                # one sigmoid over 3H lanes, one tanh over the last H lanes.
                sig = jax.nn.sigmoid(gates[:, :3 * H])
                g_g = jnp.tanh(gates[:, 3 * H:])
                i_g = sig[:, 0:H]
                f_g = sig[:, H:2 * H]
                o_g = sig[:, 2 * H:3 * H]

                c_new = i_g * g_g if t == 0 else f_g * c[l] + i_g * g_g
                h_new = o_g * jnp.tanh(c_new)
                c[l] = c_new
                h[l] = h_new

                # Exactly one MXU push per (layer, timestep): fused
                # [W_hh_l | W_ih_{l+1}] for non-last layers, plain W_hh for the
                # last layer; skipped entirely where the result is unused.
                h_bf = h_new.astype(jnp.bfloat16)
                if l < L - 1:
                    if t < seq_len - 1:
                        proj = jnp.dot(h_bf, w_cat[l],
                                       preferred_element_type=jnp.float32)
                        rec_pre[l] = proj[:, :4 * H]
                        inp_pre[l + 1] = proj[:, 4 * H:] + b_next[l]
                    else:
                        # Last timestep of this layer: only the next layer's
                        # input projection is still needed.
                        proj = jnp.dot(h_bf, w_cat[l][:, 4 * H:],
                                       preferred_element_type=jnp.float32)
                        inp_pre[l + 1] = proj + b_next[l]
                else:
                    if t < seq_len - 1:
                        rec_pre[l] = jnp.dot(h_bf, w_hh_last,
                                             preferred_element_type=jnp.float32)

        # fc head on the last layer's final hidden state (lane-padded output).
        out_ref[...] = (
            jnp.dot(h[L - 1].astype(jnp.bfloat16), fc_w_ref[...],
                    preferred_element_type=jnp.float32) + fc_b_ref[...])

    return kernel


# ----------------------------------------------------------------------------
# Wrapper (glue): time-major flatten, gate reorder, weight fusion/transpose,
# bias folding, bf16 casts, fc lane padding, reshape of prediction.
# ----------------------------------------------------------------------------
def lstm_model_forward(x, params, hidden_dim, layer_dim, output_dim):
    batch, seq, input_dim = x.shape
    H = hidden_dim
    L = layer_dim

    # time-major flattened: rows [t*batch : (t+1)*batch] hold timestep t.
    x_flat = jnp.transpose(x, (1, 0, 2)).reshape(seq * batch, input_dim)

    def reorder_gates(w):
        # PyTorch gate blocks along axis 0 are [i, f, g, o] -> [i, f, o, g].
        i, f, g, o = jnp.split(w, 4, axis=0)
        return jnp.concatenate([i, f, o, g], axis=0)

    lstm_p = params["lstm"]
    w_ih0, _, b_ih0, b_hh0 = lstm_p[0]

    inputs = [
        x_flat.astype(jnp.bfloat16),
        reorder_gates(w_ih0).T.astype(jnp.bfloat16),              # (in_d, 4H)
        reorder_gates(b_ih0 + b_hh0).reshape(1, -1),              # (1, 4H) f32
    ]
    for l in range(L - 1):
        _, w_hh_l, _, _ = lstm_p[l]
        w_ih_n, _, b_ih_n, b_hh_n = lstm_p[l + 1]
        # Fused (H, 8H): [ W_hh_l.T | W_ih_{l+1}.T ] -> one 256-wide MXU push.
        w_cat = jnp.concatenate(
            [reorder_gates(w_hh_l).T, reorder_gates(w_ih_n).T], axis=1)
        inputs += [
            w_cat.astype(jnp.bfloat16),
            reorder_gates(b_ih_n + b_hh_n).reshape(1, -1),        # (1, 4H) f32
        ]
    _, w_hh_last, _, _ = lstm_p[L - 1]
    inputs += [reorder_gates(w_hh_last).T.astype(jnp.bfloat16)]   # (H, 4H)

    # fc head, padded to a lane-dense (multiple of 128) output width.
    fc_w, fc_b = params["fc"]
    out_total = fc_w.shape[0]                  # output_dim * input_dim
    out_pad = 128 * ((out_total + 127) // 128)
    fc_w_t = jnp.zeros((H, out_pad), jnp.float32).at[:, :out_total].set(fc_w.T)
    fc_b_p = jnp.zeros((1, out_pad), jnp.float32).at[:, :out_total].set(
        fc_b.reshape(1, -1))
    inputs += [fc_w_t.astype(jnp.bfloat16), fc_b_p]

    kernel = make_lstm_kernel(L, seq, batch, H)
    out = pl.pallas_call(
        kernel,
        out_shape=jax.ShapeDtypeStruct((batch, out_pad), jnp.float32),
        in_specs=[pl.BlockSpec(memory_space=pltpu.MemorySpace.VMEM)] * len(inputs),
        out_specs=pl.BlockSpec(memory_space=pltpu.MemorySpace.VMEM),
        scratch_shapes=[
            # Lane-dense (4H = 128 wide) layer-0 pre-activation buffer.
            pltpu.VMEM((seq * batch, 4 * H), jnp.float32),
        ],
    )(*inputs)

    # pred = out.view(-1, output_dim, x.shape[2]); drop the lane padding.
    return out[:, :out_total].reshape(batch, output_dim, input_dim)


# ----------------------------------------------------------------------------
# Deterministic parameter init (PyTorch-style U(-1/sqrt(H), 1/sqrt(H))).
# ----------------------------------------------------------------------------
def init_params(key, input_dim, hidden_dim, layer_dim, output_dim):
    bound = 1.0 / np.sqrt(hidden_dim)
    params = {"lstm": []}
    for l in range(layer_dim):
        in_d = input_dim if l == 0 else hidden_dim
        key, k1, k2, k3, k4 = jax.random.split(key, 5)
        w_ih = jax.random.uniform(k1, (4 * hidden_dim, in_d), jnp.float32, -bound, bound)
        w_hh = jax.random.uniform(k2, (4 * hidden_dim, hidden_dim), jnp.float32, -bound, bound)
        b_ih = jax.random.uniform(k3, (4 * hidden_dim,), jnp.float32, -bound, bound)
        b_hh = jax.random.uniform(k4, (4 * hidden_dim,), jnp.float32, -bound, bound)
        params["lstm"].append((w_ih, w_hh, b_ih, b_hh))
    key, k1, k2 = jax.random.split(key, 3)
    fc_w = jax.random.uniform(k1, (output_dim * input_dim, hidden_dim),
                              jnp.float32, -bound, bound)
    fc_b = jax.random.uniform(k2, (output_dim * input_dim,), jnp.float32, -bound, bound)
    params["fc"] = (fc_w, fc_b)
    return params


# ----------------------------------------------------------------------------
# Pure-JAX reference (mirrors nn.LSTM(batch_first=True) + nn.Linear + view),
# with PyTorch's native gate order (i, f, g, o), full f32.
# ----------------------------------------------------------------------------
def reference_forward(x, params, hidden_dim, layer_dim, output_dim):
    batch, seq, input_dim = x.shape
    layer_in = x
    for l in range(layer_dim):
        w_ih, w_hh, b_ih, b_hh = params["lstm"][l]
        h = jnp.zeros((batch, hidden_dim), jnp.float32)
        c = jnp.zeros((batch, hidden_dim), jnp.float32)
        outs = []
        for t in range(seq):
            g = layer_in[:, t, :] @ w_ih.T + h @ w_hh.T + b_ih + b_hh
            i = jax.nn.sigmoid(g[:, :hidden_dim])
            f = jax.nn.sigmoid(g[:, hidden_dim:2 * hidden_dim])
            gg = jnp.tanh(g[:, 2 * hidden_dim:3 * hidden_dim])
            o = jax.nn.sigmoid(g[:, 3 * hidden_dim:])
            c = f * c + i * gg
            h = o * jnp.tanh(c)
            outs.append(h)
        layer_in = jnp.stack(outs, axis=1)
    fc_w, fc_b = params["fc"]
    out = layer_in[:, -1, :] @ fc_w.T + fc_b
    return out.reshape(batch, output_dim, input_dim)


if __name__ == "__main__":
    # Small shapes consistent with LSTMModel(input_dim, hidden_dim, layer_dim,
    # output_dim): x is (batch, seq, input_dim).
    batch, seq, input_dim = 8, 8, 16
    hidden_dim, layer_dim, output_dim = 32, 2, 4

    key = jax.random.PRNGKey(0)
    key, kx = jax.random.split(key)
    x = jax.random.normal(kx, (batch, seq, input_dim), jnp.float32)
    params = init_params(key, input_dim, hidden_dim, layer_dim, output_dim)

    pred = lstm_model_forward(x, params, hidden_dim, layer_dim, output_dim)
    pred = jax.block_until_ready(pred)
    assert pred.shape == (batch, output_dim, input_dim)

    ref = reference_forward(x, params, hidden_dim, layer_dim, output_dim)
    ref = jax.block_until_ready(ref)
    assert np.allclose(np.asarray(pred), np.asarray(ref), rtol=1e-2, atol=1e-2), (
        "Pallas LSTM output mismatch vs reference")

    print("KERNEL_OK")
</pallas_src>

<mosaic_0001>
module attributes {stable_mosaic.version = 11 : i64} {
  func.func @kernel(%arg0: memref<64x16xbf16, #tpu.memory_space<vmem>>, %arg1: memref<16x128xbf16, #tpu.memory_space<vmem>>, %arg2: memref<1x128xf32, #tpu.memory_space<vmem>>, %arg3: memref<32x256xbf16, #tpu.memory_space<vmem>>, %arg4: memref<1x128xf32, #tpu.memory_space<vmem>>, %arg5: memref<32x128xbf16, #tpu.memory_space<vmem>>, %arg6: memref<32x128xbf16, #tpu.memory_space<vmem>>, %arg7: memref<1x128xf32, #tpu.memory_space<vmem>>, %arg8: memref<8x128xf32, #tpu.memory_space<vmem>>, %arg9: memref<64x128xf32, #tpu.memory_space<vmem>>) attributes {dimension_semantics = [], scalar_prefetch = 0 : i64, scratch_operands = 1 : i64, tpu.core_type = #tpu.core_type<tc>} {
    %c0 = arith.constant 0 : index
    %c0_0 = arith.constant 0 : index
    %0 = vector.load %arg0[%c0, %c0_0] : memref<64x16xbf16, #tpu.memory_space<vmem>>, vector<64x16xbf16>
    %c0_1 = arith.constant 0 : index
    %c0_2 = arith.constant 0 : index
    %1 = vector.load %arg1[%c0_1, %c0_2] : memref<16x128xbf16, #tpu.memory_space<vmem>>, vector<16x128xbf16>
    %cst = arith.constant dense<0.000000e+00> : vector<64x128xf32>
    %2 = tpu.matmul %0, %1, %cst {dimension_numbers = #tpu.dot_dimension_numbers<[1], [0], [0], [1], [0, 0, 1, 1], [], []>} : vector<64x16xbf16>, vector<16x128xbf16>, vector<64x128xf32> -> vector<64x128xf32>
    %c0_3 = arith.constant 0 : index
    %c0_4 = arith.constant 0 : index
    %3 = vector.load %arg2[%c0_3, %c0_4] : memref<1x128xf32, #tpu.memory_space<vmem>>, vector<1x128xf32>
    %4 = vector.broadcast %3 : vector<1x128xf32> to vector<64x128xf32>
    %5 = arith.addf %2, %4 : vector<64x128xf32>
    %c0_5 = arith.constant 0 : index
    %c0_6 = arith.constant 0 : index
    %6 = vector.load %arg9[%c0_5, %c0_6] : memref<64x128xf32, #tpu.memory_space<vmem>>, vector<64x128xf32>
    tpu.vector_store %arg9[%c0_5, %c0_6], %5 {strides = array<i32>} : memref<64x128xf32, #tpu.memory_space<vmem>>, vector<64x128xf32>,
    %c0_7 = arith.constant 0 : index
    %c0_8 = arith.constant 0 : index
    %7 = vector.load %arg3[%c0_7, %c0_8] : memref<32x256xbf16, #tpu.memory_space<vmem>>, vector<32x256xbf16>
    %c0_9 = arith.constant 0 : index
    %c0_10 = arith.constant 0 : index
    %8 = vector.load %arg4[%c0_9, %c0_10] : memref<1x128xf32, #tpu.memory_space<vmem>>, vector<1x128xf32>
    %c0_11 = arith.constant 0 : index
    %c0_12 = arith.constant 0 : index
    %9 = vector.load %arg5[%c0_11, %c0_12] : memref<32x128xbf16, #tpu.memory_space<vmem>>, vector<32x128xbf16>
    %c0_13 = arith.constant 0 : index
    %c0_14 = arith.constant 0 : index
    %10 = vector.load %arg9[%c0_13, %c0_14] : memref<64x128xf32, #tpu.memory_space<vmem>>, vector<8x128xf32>
    %11 = vector.extract_strided_slice %10 {offsets = [0, 0], sizes = [8, 96], strides = [1, 1]} : vector<8x128xf32> to vector<8x96xf32>
    %12 = arith.negf %11 : vector<8x96xf32>
    %13 = math.exp %12 : vector<8x96xf32>
    %cst_15 = arith.constant 1.000000e+00 : f32
    %14 = vector.broadcast %cst_15 : f32 to vector<8x96xf32>
    %15 = arith.addf %14, %13 : vector<8x96xf32>
    %16 = arith.divf %14, %15 : vector<8x96xf32>
    %17 = vector.extract_strided_slice %10 {offsets = [0, 96], sizes = [8, 32], strides = [1, 1]} : vector<8x128xf32> to vector<8x32xf32>
    %18 = math.tanh %17 : vector<8x32xf32>
    %19 = vector.extract_strided_slice %16 {offsets = [0, 0], sizes = [8, 32], strides = [1, 1]} : vector<8x96xf32> to vector<8x32xf32>
    %20 = vector.extract_strided_slice %16 {offsets = [0, 64], sizes = [8, 32], strides = [1, 1]} : vector<8x96xf32> to vector<8x32xf32>
    %21 = arith.mulf %19, %18 : vector<8x32xf32>
    %22 = math.tanh %21 : vector<8x32xf32>
    %23 = arith.mulf %20, %22 : vector<8x32xf32>
    %24 = arith.truncf %23 : vector<8x32xf32> to vector<8x32xbf16>
    %cst_16 = arith.constant dense<0.000000e+00> : vector<8x256xf32>
    %25 = tpu.matmul %24, %7, %cst_16 {dimension_numbers = #tpu.dot_dimension_numbers<[1], [0], [0], [1], [0, 0, 1, 1], [], []>} : vector<8x32xbf16>, vector<32x256xbf16>, vector<8x256xf32> -> vector<8x256xf32>
    %26 = vector.extract_strided_slice %25 {offsets = [0, 0], sizes = [8, 128], strides = [1, 1]} : vector<8x256xf32> to vector<8x128xf32>
    %27 = vector.extract_strided_slice %25 {offsets = [0, 128], sizes = [8, 128], strides = [1, 1]} : vector<8x256xf32> to vector<8x128xf32>
    %28 = vector.broadcast %8 : vector<1x128xf32> to vector<8x128xf32>
    %29 = arith.addf %27, %28 : vector<8x128xf32>
    %30 = vector.extract_strided_slice %29 {offsets = [0, 0], sizes = [8, 96], strides = [1, 1]} : vector<8x128xf32> to vector<8x96xf32>
    %31 = arith.negf %30 : vector<8x96xf32>
    %32 = math.exp %31 : vector<8x96xf32>
    %cst_17 = arith.constant 1.000000e+00 : f32
    %33 = vector.broadcast %cst_17 : f32 to vector<8x96xf32>
    %34 = arith.addf %33, %32 : vector<8x96xf32>
    %35 = arith.divf %33, %34 : vector<8x96xf32>
    %36 = vector.extract_strided_slice %29 {offsets = [0, 96], sizes = [8, 32], strides = [1, 1]} : vector<8x128xf32> to vector<8x32xf32>
    %37 = math.tanh %36 : vector<8x32xf32>
    %38 = vector.extract_strided_slice %35 {offsets = [0, 0], sizes = [8, 32], strides = [1, 1]} : vector<8x96xf32> to vector<8x32xf32>
    %39 = vector.extract_strided_slice %35 {offsets = [0, 64], sizes = [8, 32], strides = [1, 1]} : vector<8x96xf32> to vector<8x32xf32>
    %40 = arith.mulf %38, %37 : vector<8x32xf32>
    %41 = math.tanh %40 : vector<8x32xf32>
    %42 = arith.mulf %39, %41 : vector<8x32xf32>
    %43 = arith.truncf %42 : vector<8x32xf32> to vector<8x32xbf16>
    %cst_18 = arith.constant dense<0.000000e+00> : vector<8x128xf32>
    %44 = tpu.matmul %43, %9, %cst_18 {dimension_numbers = #tpu.dot_dimension_numbers<[1], [0], [0], [1], [0, 0, 1, 1], [], []>} : vector<8x32xbf16>, vector<32x128xbf16>, vector<8x128xf32> -> vector<8x128xf32>
    %c8 = arith.constant 8 : index
    %c0_19 = arith.constant 0 : index
    %45 = vector.load %arg9[%c8, %c0_19] : memref<64x128xf32, #tpu.memory_space<vmem>>, vector<8x128xf32>
    %46 = arith.addf %45, %26 : vector<8x128xf32>
    %47 = vector.extract_strided_slice %46 {offsets = [0, 0], sizes = [8, 96], strides = [1, 1]} : vector<8x128xf32> to vector<8x96xf32>
    %48 = arith.negf %47 : vector<8x96xf32>
    %49 = math.exp %48 : vector<8x96xf32>
    %cst_20 = arith.constant 1.000000e+00 : f32
    %50 = vector.broadcast %cst_20 : f32 to vector<8x96xf32>
    %51 = arith.addf %50, %49 : vector<8x96xf32>
    %52 = arith.divf %50, %51 : vector<8x96xf32>
    %53 = vector.extract_strided_slice %46 {offsets = [0, 96], sizes = [8, 32], strides = [1, 1]} : vector<8x128xf32> to vector<8x32xf32>
    %54 = math.tanh %53 : vector<8x32xf32>
    %55 = vector.extract_strided_slice %52 {offsets = [0, 0], sizes = [8, 32], strides = [1, 1]} : vector<8x96xf32> to vector<8x32xf32>
    %56 = vector.extract_strided_slice %52 {offsets = [0, 32], sizes = [8, 32], strides = [1, 1]} : vector<8x96xf32> to vector<8x32xf32>
    %57 = vector.extract_strided_slice %52 {offsets = [0, 64], sizes = [8, 32], strides = [1, 1]} : vector<8x96xf32> to vector<8x32xf32>
    %58 = arith.mulf %56, %21 : vector<8x32xf32>
    %59 = arith.mulf %55, %54 : vector<8x32xf32>
    %60 = arith.addf %58, %59 : vector<8x32xf32>
    %61 = math.tanh %60 : vector<8x32xf32>
    %62 = arith.mulf %57, %61 : vector<8x32xf32>
    %63 = arith.truncf %62 : vector<8x32xf32> to vector<8x32xbf16>
    %cst_21 = arith.constant dense<0.000000e+00> : vector<8x256xf32>
    %64 = tpu.matmul %63, %7, %cst_21 {dimension_numbers = #tpu.dot_dimension_numbers<[1], [0], [0], [1], [0, 0, 1, 1], [], []>} : vector<8x32xbf16>, vector<32x256xbf16>, vector<8x256xf32> -> vector<8x256xf32>
    %65 = vector.extract_strided_slice %64 {offsets = [0, 0], sizes = [8, 128], strides = [1, 1]} : vector<8x256xf32> to vector<8x128xf32>
    %66 = vector.extract_strided_slice %64 {offsets = [0, 128], sizes = [8, 128], strides = [1, 1]} : vector<8x256xf32> to vector<8x128xf32>
    %67 = vector.broadcast %8 : vector<1x128xf32> to vector<8x128xf32>
    %68 = arith.addf %66, %67 : vector<8x128xf32>
    %69 = arith.addf %68, %44 : vector<8x128xf32>
    %70 = vector.extract_strided_slice %69 {offsets = [0, 0], sizes = [8, 96], strides = [1, 1]} : vector<8x128xf32> to vector<8x96xf32>
    %71 = arith.negf %70 : vector<8x96xf32>
    %72 = math.exp %71 : vector<8x96xf32>
    %cst_22 = arith.constant 1.000000e+00 : f32
    %73 = vector.broadcast %cst_22 : f32 to vector<8x96xf32>
    %74 = arith.addf %73, %72 : vector<8x96xf32>
    %75 = arith.divf %73, %74 : vector<8x96xf32>
    %76 = vector.extract_strided_slice %69 {offsets = [0, 96], sizes = [8, 32], strides = [1, 1]} : vector<8x128xf32> to vector<8x32xf32>
    %77 = math.tanh %76 : vector<8x32xf32>
    %78 = vector.extract_strided_slice %75 {offsets = [0, 0], sizes = [8, 32], strides = [1, 1]} : vector<8x96xf32> to vector<8x32xf32>
    %79 = vector.extract_strided_slice %75 {offsets = [0, 32], sizes = [8, 32], strides = [1, 1]} : vector<8x96xf32> to vector<8x32xf32>
    %80 = vector.extract_strided_slice %75 {offsets = [0, 64], sizes = [8, 32], strides = [1, 1]} : vector<8x96xf32> to vector<8x32xf32>
    %81 = arith.mulf %79, %40 : vector<8x32xf32>
    %82 = arith.mulf %78, %77 : vector<8x32xf32>
    %83 = arith.addf %81, %82 : vector<8x32xf32>
    %84 = math.tanh %83 : vector<8x32xf32>
    %85 = arith.mulf %80, %84 : vector<8x32xf32>
    %86 = arith.truncf %85 : vector<8x32xf32> to vector<8x32xbf16>
    %cst_23 = arith.constant dense<0.000000e+00> : vector<8x128xf32>
    %87 = tpu.matmul %86, %9, %cst_23 {dimension_numbers = #tpu.dot_dimension_numbers<[1], [0], [0], [1], [0, 0, 1, 1], [], []>} : vector<8x32xbf16>, vector<32x128xbf16>, vector<8x128xf32> -> vector<8x128xf32>
    %c16 = arith.constant 16 : index
    %c0_24 = arith.constant 0 : index
    %88 = vector.load %arg9[%c16, %c0_24] : memref<64x128xf32, #tpu.memory_space<vmem>>, vector<8x128xf32>
    %89 = arith.addf %88, %65 : vector<8x128xf32>
    %90 = vector.extract_strided_slice %89 {offsets = [0, 0], sizes = [8, 96], strides = [1, 1]} : vector<8x128xf32> to vector<8x96xf32>
    %91 = arith.negf %90 : vector<8x96xf32>
    %92 = math.exp %91 : vector<8x96xf32>
    %cst_25 = arith.constant 1.000000e+00 : f32
    %93 = vector.broadcast %cst_25 : f32 to vector<8x96xf32>
    %94 = arith.addf %93, %92 : vector<8x96xf32>
    %95 = arith.divf %93, %94 : vector<8x96xf32>
    %96 = vector.extract_strided_slice %89 {offsets = [0, 96], sizes = [8, 32], strides = [1, 1]} : vector<8x128xf32> to vector<8x32xf32>
    %97 = math.tanh %96 : vector<8x32xf32>
    %98 = vector.extract_strided_slice %95 {offsets = [0, 0], sizes = [8, 32], strides = [1, 1]} : vector<8x96xf32> to vector<8x32xf32>
    %99 = vector.extract_strided_slice %95 {offsets = [0, 32], sizes = [8, 32], strides = [1, 1]} : vector<8x96xf32> to vector<8x32xf32>
    %100 = vector.extract_strided_slice %95 {offsets = [0, 64], sizes = [8, 32], strides = [1, 1]} : vector<8x96xf32> to vector<8x32xf32>
    %101 = arith.mulf %99, %60 : vector<8x32xf32>
    %102 = arith.mulf %98, %97 : vector<8x32xf32>
    %103 = arith.addf %101, %102 : vector<8x32xf32>
    %104 = math.tanh %103 : vector<8x32xf32>
    %105 = arith.mulf %100, %104 : vector<8x32xf32>
    %106 = arith.truncf %105 : vector<8x32xf32> to vector<8x32xbf16>
    %cst_26 = arith.constant dense<0.000000e+00> : vector<8x256xf32>
    %107 = tpu.matmul %106, %7, %cst_26 {dimension_numbers = #tpu.dot_dimension_numbers<[1], [0], [0], [1], [0, 0, 1, 1], [], []>} : vector<8x32xbf16>, vector<32x256xbf16>, vector<8x256xf32> -> vector<8x256xf32>
    %108 = vector.extract_strided_slice %107 {offsets = [0, 0], sizes = [8, 128], strides = [1, 1]} : vector<8x256xf32> to vector<8x128xf32>
    %109 = vector.extract_strided_slice %107 {offsets = [0, 128], sizes = [8, 128], strides = [1, 1]} : vector<8x256xf32> to vector<8x128xf32>
    %110 = vector.broadcast %8 : vector<1x128xf32> to vector<8x128xf32>
    %111 = arith.addf %109, %110 : vector<8x128xf32>
    %112 = arith.addf %111, %87 : vector<8x128xf32>
    %113 = vector.extract_strided_slice %112 {offsets = [0, 0], sizes = [8, 96], strides = [1, 1]} : vector<8x128xf32> to vector<8x96xf32>
    %114 = arith.negf %113 : vector<8x96xf32>
    %115 = math.exp %114 : vector<8x96xf32>
    %cst_27 = arith.constant 1.000000e+00 : f32
    %116 = vector.broadcast %cst_27 : f32 to vector<8x96xf32>
    %117 = arith.addf %116, %115 : vector<8x96xf32>
    %118 = arith.divf %116, %117 : vector<8x96xf32>
    %119 = vector.extract_strided_slice %112 {offsets = [0, 96], sizes = [8, 32], strides = [1, 1]} : vector<8x128xf32> to vector<8x32xf32>
    %120 = math.tanh %119 : vector<8x32xf32>
    %121 = vector.extract_strided_slice %118 {offsets = [0, 0], sizes = [8, 32], strides = [1, 1]} : vector<8x96xf32> to vector<8x32xf32>
    %122 = vector.extract_strided_slice %118 {offsets = [0, 32], sizes = [8, 32], strides = [1, 1]} : vector<8x96xf32> to vector<8x32xf32>
    %123 = vector.extract_strided_slice %118 {offsets = [0, 64], sizes = [8, 32], strides = [1, 1]} : vector<8x96xf32> to vector<8x32xf32>
    %124 = arith.mulf %122, %83 : vector<8x32xf32>
    %125 = arith.mulf %121, %120 : vector<8x32xf32>
    %126 = arith.addf %124, %125 : vector<8x32xf32>
    %127 = math.tanh %126 : vector<8x32xf32>
    %128 = arith.mulf %123, %127 : vector<8x32xf32>
    %129 = arith.truncf %128 : vector<8x32xf32> to vector<8x32xbf16>
    %cst_28 = arith.constant dense<0.000000e+00> : vector<8x128xf32>
    %130 = tpu.matmul %129, %9, %cst_28 {dimension_numbers = #tpu.dot_dimension_numbers<[1], [0], [0], [1], [0, 0, 1, 1], [], []>} : vector<8x32xbf16>, vector<32x128xbf16>, vector<8x128xf32> -> vector<8x128xf32>
    %c24 = arith.constant 24 : index
    %c0_29 = arith.constant 0 : index
    %131 = vector.load %arg9[%c24, %c0_29] : memref<64x128xf32, #tpu.memory_space<vmem>>, vector<8x128xf32>
    %132 = arith.addf %131, %108 : vector<8x128xf32>
    %133 = vector.extract_strided_slice %132 {offsets = [0, 0], sizes = [8, 96], strides = [1, 1]} : vector<8x128xf32> to vector<8x96xf32>
    %134 = arith.negf %133 : vector<8x96xf32>
    %135 = math.exp %134 : vector<8x96xf32>
    %cst_30 = arith.constant 1.000000e+00 : f32
    %136 = vector.broadcast %cst_30 : f32 to vector<8x96xf32>
    %137 = arith.addf %136, %135 : vector<8x96xf32>
    %138 = arith.divf %136, %137 : vector<8x96xf32>
    %139 = vector.extract_strided_slice %132 {offsets = [0, 96], sizes = [8, 32], strides = [1, 1]} : vector<8x128xf32> to vector<8x32xf32>
    %140 = math.tanh %139 : vector<8x32xf32>
    %141 = vector.extract_strided_slice %138 {offsets = [0, 0], sizes = [8, 32], strides = [1, 1]} : vector<8x96xf32> to vector<8x32xf32>
    %142 = vector.extract_strided_slice %138 {offsets = [0, 32], sizes = [8, 32], strides = [1, 1]} : vector<8x96xf32> to vector<8x32xf32>
    %143 = vector.extract_strided_slice %138 {offsets = [0, 64], sizes = [8, 32], strides = [1, 1]} : vector<8x96xf32> to vector<8x32xf32>
    %144 = arith.mulf %142, %103 : vector<8x32xf32>
    %145 = arith.mulf %141, %140 : vector<8x32xf32>
    %146 = arith.addf %144, %145 : vector<8x32xf32>
    %147 = math.tanh %146 : vector<8x32xf32>
    %148 = arith.mulf %143, %147 : vector<8x32xf32>
    %149 = arith.truncf %148 : vector<8x32xf32> to vector<8x32xbf16>
    %cst_31 = arith.constant dense<0.000000e+00> : vector<8x256xf32>
    %150 = tpu.matmul %149, %7, %cst_31 {dimension_numbers = #tpu.dot_dimension_numbers<[1], [0], [0], [1], [0, 0, 1, 1], [], []>} : vector<8x32xbf16>, vector<32x256xbf16>, vector<8x256xf32> -> vector<8x256xf32>
    %151 = vector.extract_strided_slice %150 {offsets = [0, 0], sizes = [8, 128], strides = [1, 1]} : vector<8x256xf32> to vector<8x128xf32>
    %152 = vector.extract_strided_slice %150 {offsets = [0, 128], sizes = [8, 128], strides = [1, 1]} : vector<8x256xf32> to vector<8x128xf32>
    %153 = vector.broadcast %8 : vector<1x128xf32> to vector<8x128xf32>
    %154 = arith.addf %152, %153 : vector<8x128xf32>
    %155 = arith.addf %154, %130 : vector<8x128xf32>
    %156 = vector.extract_strided_slice %155 {offsets = [0, 0], sizes = [8, 96], strides = [1, 1]} : vector<8x128xf32> to vector<8x96xf32>
    %157 = arith.negf %156 : vector<8x96xf32>
    %158 = math.exp %157 : vector<8x96xf32>
    %cst_32 = arith.constant 1.000000e+00 : f32
    %159 = vector.broadcast %cst_32 : f32 to vector<8x96xf32>
    %160 = arith.addf %159, %158 : vector<8x96xf32>
    %161 = arith.divf %159, %160 : vector<8x96xf32>
    %162 = vector.extract_strided_slice %155 {offsets = [0, 96], sizes = [8, 32], strides = [1, 1]} : vector<8x128xf32> to vector<8x32xf32>
    %163 = math.tanh %162 : vector<8x32xf32>
    %164 = vector.extract_strided_slice %161 {offsets = [0, 0], sizes = [8, 32], strides = [1, 1]} : vector<8x96xf32> to vector<8x32xf32>
    %165 = vector.extract_strided_slice %161 {offsets = [0, 32], sizes = [8, 32], strides = [1, 1]} : vector<8x96xf32> to vector<8x32xf32>
    %166 = vector.extract_strided_slice %161 {offsets = [0, 64], sizes = [8, 32], strides = [1, 1]} : vector<8x96xf32> to vector<8x32xf32>
    %167 = arith.mulf %165, %126 : vector<8x32xf32>
    %168 = arith.mulf %164, %163 : vector<8x32xf32>
    %169 = arith.addf %167, %168 : vector<8x32xf32>
    %170 = math.tanh %169 : vector<8x32xf32>
    %171 = arith.mulf %166, %170 : vector<8x32xf32>
    %172 = arith.truncf %171 : vector<8x32xf32> to vector<8x32xbf16>
    %cst_33 = arith.constant dense<0.000000e+00> : vector<8x128xf32>
    %173 = tpu.matmul %172, %9, %cst_33 {dimension_numbers = #tpu.dot_dimension_numbers<[1], [0], [0], [1], [0, 0, 1, 1], [], []>} : vector<8x32xbf16>, vector<32x128xbf16>, vector<8x128xf32> -> vector<8x128xf32>
    %c32 = arith.constant 32 : index
    %c0_34 = arith.constant 0 : index
    %174 = vector.load %arg9[%c32, %c0_34] : memref<64x128xf32, #tpu.memory_space<vmem>>, vector<8x128xf32>
    %175 = arith.addf %174, %151 : vector<8x128xf32>
    %176 = vector.extract_strided_slice %175 {offsets = [0, 0], sizes = [8, 96], strides = [1, 1]} : vector<8x128xf32> to vector<8x96xf32>
    %177 = arith.negf %176 : vector<8x96xf32>
    %178 = math.exp %177 : vector<8x96xf32>
    %cst_35 = arith.constant 1.000000e+00 : f32
    %179 = vector.broadcast %cst_35 : f32 to vector<8x96xf32>
    %180 = arith.addf %179, %178 : vector<8x96xf32>
    %181 = arith.divf %179, %180 : vector<8x96xf32>
    %182 = vector.extract_strided_slice %175 {offsets = [0, 96], sizes = [8, 32], strides = [1, 1]} : vector<8x128xf32> to vector<8x32xf32>
    %183 = math.tanh %182 : vector<8x32xf32>
    %184 = vector.extract_strided_slice %181 {offsets = [0, 0], sizes = [8, 32], strides = [1, 1]} : vector<8x96xf32> to vector<8x32xf32>
    %185 = vector.extract_strided_slice %181 {offsets = [0, 32], sizes = [8, 32], strides = [1, 1]} : vector<8x96xf32> to vector<8x32xf32>
    %186 = vector.extract_strided_slice %181 {offsets = [0, 64], sizes = [8, 32], strides = [1, 1]} : vector<8x96xf32> to vector<8x32xf32>
    %187 = arith.mulf %185, %146 : vector<8x32xf32>
    %188 = arith.mulf %184, %183 : vector<8x32xf32>
    %189 = arith.addf %187, %188 : vector<8x32xf32>
    %190 = math.tanh %189 : vector<8x32xf32>
    %191 = arith.mulf %186, %190 : vector<8x32xf32>
    %192 = arith.truncf %191 : vector<8x32xf32> to vector<8x32xbf16>
    %cst_36 = arith.constant dense<0.000000e+00> : vector<8x256xf32>
    %193 = tpu.matmul %192, %7, %cst_36 {dimension_numbers = #tpu.dot_dimension_numbers<[1], [0], [0], [1], [0, 0, 1, 1], [], []>} : vector<8x32xbf16>, vector<32x256xbf16>, vector<8x256xf32> -> vector<8x256xf32>
    %194 = vector.extract_strided_slice %193 {offsets = [0, 0], sizes = [8, 128], strides = [1, 1]} : vector<8x256xf32> to vector<8x128xf32>
    %195 = vector.extract_strided_slice %193 {offsets = [0, 128], sizes = [8, 128], strides = [1, 1]} : vector<8x256xf32> to vector<8x128xf32>
    %196 = vector.broadcast %8 : vector<1x128xf32> to vector<8x128xf32>
    %197 = arith.addf %195, %196 : vector<8x128xf32>
    %198 = arith.addf %197, %173 : vector<8x128xf32>
    %199 = vector.extract_strided_slice %198 {offsets = [0, 0], sizes = [8, 96], strides = [1, 1]} : vector<8x128xf32> to vector<8x96xf32>
    %200 = arith.negf %199 : vector<8x96xf32>
    %201 = math.exp %200 : vector<8x96xf32>
    %cst_37 = arith.constant 1.000000e+00 : f32
    %202 = vector.broadcast %cst_37 : f32 to vector<8x96xf32>
    %203 = arith.addf %202, %201 : vector<8x96xf32>
    %204 = arith.divf %202, %203 : vector<8x96xf32>
    %205 = vector.extract_strided_slice %198 {offsets = [0, 96], sizes = [8, 32], strides = [1, 1]} : vector<8x128xf32> to vector<8x32xf32>
    %206 = math.tanh %205 : vector<8x32xf32>
    %207 = vector.extract_strided_slice %204 {offsets = [0, 0], sizes = [8, 32], strides = [1, 1]} : vector<8x96xf32> to vector<8x32xf32>
    %208 = vector.extract_strided_slice %204 {offsets = [0, 32], sizes = [8, 32], strides = [1, 1]} : vector<8x96xf32> to vector<8x32xf32>
    %209 = vector.extract_strided_slice %204 {offsets = [0, 64], sizes = [8, 32], strides = [1, 1]} : vector<8x96xf32> to vector<8x32xf32>
    %210 = arith.mulf %208, %169 : vector<8x32xf32>
    %211 = arith.mulf %207, %206 : vector<8x32xf32>
    %212 = arith.addf %210, %211 : vector<8x32xf32>
    %213 = math.tanh %212 : vector<8x32xf32>
    %214 = arith.mulf %209, %213 : vector<8x32xf32>
    %215 = arith.truncf %214 : vector<8x32xf32> to vector<8x32xbf16>
    %cst_38 = arith.constant dense<0.000000e+00> : vector<8x128xf32>
    %216 = tpu.matmul %215, %9, %cst_38 {dimension_numbers = #tpu.dot_dimension_numbers<[1], [0], [0], [1], [0, 0, 1, 1], [], []>} : vector<8x32xbf16>, vector<32x128xbf16>, vector<8x128xf32> -> vector<8x128xf32>
    %c40 = arith.constant 40 : index
    %c0_39 = arith.constant 0 : index
    %217 = vector.load %arg9[%c40, %c0_39] : memref<64x128xf32, #tpu.memory_space<vmem>>, vector<8x128xf32>
    %218 = arith.addf %217, %194 : vector<8x128xf32>
    %219 = vector.extract_strided_slice %218 {offsets = [0, 0], sizes = [8, 96], strides = [1, 1]} : vector<8x128xf32> to vector<8x96xf32>
    %220 = arith.negf %219 : vector<8x96xf32>
    %221 = math.exp %220 : vector<8x96xf32>
    %cst_40 = arith.constant 1.000000e+00 : f32
    %222 = vector.broadcast %cst_40 : f32 to vector<8x96xf32>
    %223 = arith.addf %222, %221 : vector<8x96xf32>
    %224 = arith.divf %222, %223 : vector<8x96xf32>
    %225 = vector.extract_strided_slice %218 {offsets = [0, 96], sizes = [8, 32], strides = [1, 1]} : vector<8x128xf32> to vector<8x32xf32>
    %226 = math.tanh %225 : vector<8x32xf32>
    %227 = vector.extract_strided_slice %224 {offsets = [0, 0], sizes = [8, 32], strides = [1, 1]} : vector<8x96xf32> to vector<8x32xf32>
    %228 = vector.extract_strided_slice %224 {offsets = [0, 32], sizes = [8, 32], strides = [1, 1]} : vector<8x96xf32> to vector<8x32xf32>
    %229 = vector.extract_strided_slice %224 {offsets = [0, 64], sizes = [8, 32], strides = [1, 1]} : vector<8x96xf32> to vector<8x32xf32>
    %230 = arith.mulf %228, %189 : vector<8x32xf32>
    %231 = arith.mulf %227, %226 : vector<8x32xf32>
    %232 = arith.addf %230, %231 : vector<8x32xf32>
    %233 = math.tanh %232 : vector<8x32xf32>
    %234 = arith.mulf %229, %233 : vector<8x32xf32>
    %235 = arith.truncf %234 : vector<8x32xf32> to vector<8x32xbf16>
    %cst_41 = arith.constant dense<0.000000e+00> : vector<8x256xf32>
    %236 = tpu.matmul %235, %7, %cst_41 {dimension_numbers = #tpu.dot_dimension_numbers<[1], [0], [0], [1], [0, 0, 1, 1], [], []>} : vector<8x32xbf16>, vector<32x256xbf16>, vector<8x256xf32> -> vector<8x256xf32>
    %237 = vector.extract_strided_slice %236 {offsets = [0, 0], sizes = [8, 128], strides = [1, 1]} : vector<8x256xf32> to vector<8x128xf32>
    %238 = vector.extract_strided_slice %236 {offsets = [0, 128], sizes = [8, 128], strides = [1, 1]} : vector<8x256xf32> to vector<8x128xf32>
    %239 = vector.broadcast %8 : vector<1x128xf32> to vector<8x128xf32>
    %240 = arith.addf %238, %239 : vector<8x128xf32>
    %241 = arith.addf %240, %216 : vector<8x128xf32>
    %242 = vector.extract_strided_slice %241 {offsets = [0, 0], sizes = [8, 96], strides = [1, 1]} : vector<8x128xf32> to vector<8x96xf32>
    %243 = arith.negf %242 : vector<8x96xf32>
    %244 = math.exp %243 : vector<8x96xf32>
    %cst_42 = arith.constant 1.000000e+00 : f32
    %245 = vector.broadcast %cst_42 : f32 to vector<8x96xf32>
    %246 = arith.addf %245, %244 : vector<8x96xf32>
    %247 = arith.divf %245, %246 : vector<8x96xf32>
    %248 = vector.extract_strided_slice %241 {offsets = [0, 96], sizes = [8, 32], strides = [1, 1]} : vector<8x128xf32> to vector<8x32xf32>
    %249 = math.tanh %248 : vector<8x32xf32>
    %250 = vector.extract_strided_slice %247 {offsets = [0, 0], sizes = [8, 32], strides = [1, 1]} : vector<8x96xf32> to vector<8x32xf32>
    %251 = vector.extract_strided_slice %247 {offsets = [0, 32], sizes = [8, 32], strides = [1, 1]} : vector<8x96xf32> to vector<8x32xf32>
    %252 = vector.extract_strided_slice %247 {offsets = [0, 64], sizes = [8, 32], strides = [1, 1]} : vector<8x96xf32> to vector<8x32xf32>
    %253 = arith.mulf %251, %212 : vector<8x32xf32>
    %254 = arith.mulf %250, %249 : vector<8x32xf32>
    %255 = arith.addf %253, %254 : vector<8x32xf32>
    %256 = math.tanh %255 : vector<8x32xf32>
    %257 = arith.mulf %252, %256 : vector<8x32xf32>
    %258 = arith.truncf %257 : vector<8x32xf32> to vector<8x32xbf16>
    %cst_43 = arith.constant dense<0.000000e+00> : vector<8x128xf32>
    %259 = tpu.matmul %258, %9, %cst_43 {dimension_numbers = #tpu.dot_dimension_numbers<[1], [0], [0], [1], [0, 0, 1, 1], [], []>} : vector<8x32xbf16>, vector<32x128xbf16>, vector<8x128xf32> -> vector<8x128xf32>
    %c48 = arith.constant 48 : index
    %c0_44 = arith.constant 0 : index
    %260 = vector.load %arg9[%c48, %c0_44] : memref<64x128xf32, #tpu.memory_space<vmem>>, vector<8x128xf32>
    %261 = arith.addf %260, %237 : vector<8x128xf32>
    %262 = vector.extract_strided_slice %261 {offsets = [0, 0], sizes = [8, 96], strides = [1, 1]} : vector<8x128xf32> to vector<8x96xf32>
    %263 = arith.negf %262 : vector<8x96xf32>
    %264 = math.exp %263 : vector<8x96xf32>
    %cst_45 = arith.constant 1.000000e+00 : f32
    %265 = vector.broadcast %cst_45 : f32 to vector<8x96xf32>
    %266 = arith.addf %265, %264 : vector<8x96xf32>
    %267 = arith.divf %265, %266 : vector<8x96xf32>
    %268 = vector.extract_strided_slice %261 {offsets = [0, 96], sizes = [8, 32], strides = [1, 1]} : vector<8x128xf32> to vector<8x32xf32>
    %269 = math.tanh %268 : vector<8x32xf32>
    %270 = vector.extract_strided_slice %267 {offsets = [0, 0], sizes = [8, 32], strides = [1, 1]} : vector<8x96xf32> to vector<8x32xf32>
    %271 = vector.extract_strided_slice %267 {offsets = [0, 32], sizes = [8, 32], strides = [1, 1]} : vector<8x96xf32> to vector<8x32xf32>
    %272 = vector.extract_strided_slice %267 {offsets = [0, 64], sizes = [8, 32], strides = [1, 1]} : vector<8x96xf32> to vector<8x32xf32>
    %273 = arith.mulf %271, %232 : vector<8x32xf32>
    %274 = arith.mulf %270, %269 : vector<8x32xf32>
    %275 = arith.addf %273, %274 : vector<8x32xf32>
    %276 = math.tanh %275 : vector<8x32xf32>
    %277 = arith.mulf %272, %276 : vector<8x32xf32>
    %278 = arith.truncf %277 : vector<8x32xf32> to vector<8x32xbf16>
    %cst_46 = arith.constant dense<0.000000e+00> : vector<8x256xf32>
    %279 = tpu.matmul %278, %7, %cst_46 {dimension_numbers = #tpu.dot_dimension_numbers<[1], [0], [0], [1], [0, 0, 1, 1], [], []>} : vector<8x32xbf16>, vector<32x256xbf16>, vector<8x256xf32> -> vector<8x256xf32>
    %280 = vector.extract_strided_slice %279 {offsets = [0, 0], sizes = [8, 128], strides = [1, 1]} : vector<8x256xf32> to vector<8x128xf32>
    %281 = vector.extract_strided_slice %279 {offsets = [0, 128], sizes = [8, 128], strides = [1, 1]} : vector<8x256xf32> to vector<8x128xf32>
    %282 = vector.broadcast %8 : vector<1x128xf32> to vector<8x128xf32>
    %283 = arith.addf %281, %282 : vector<8x128xf32>
    %284 = arith.addf %283, %259 : vector<8x128xf32>
    %285 = vector.extract_strided_slice %284 {offsets = [0, 0], sizes = [8, 96], strides = [1, 1]} : vector<8x128xf32> to vector<8x96xf32>
    %286 = arith.negf %285 : vector<8x96xf32>
    %287 = math.exp %286 : vector<8x96xf32>
    %cst_47 = arith.constant 1.000000e+00 : f32
    %288 = vector.broadcast %cst_47 : f32 to vector<8x96xf32>
    %289 = arith.addf %288, %287 : vector<8x96xf32>
    %290 = arith.divf %288, %289 : vector<8x96xf32>
    %291 = vector.extract_strided_slice %284 {offsets = [0, 96], sizes = [8, 32], strides = [1, 1]} : vector<8x128xf32> to vector<8x32xf32>
    %292 = math.tanh %291 : vector<8x32xf32>
    %293 = vector.extract_strided_slice %290 {offsets = [0, 0], sizes = [8, 32], strides = [1, 1]} : vector<8x96xf32> to vector<8x32xf32>
    %294 = vector.extract_strided_slice %290 {offsets = [0, 32], sizes = [8, 32], strides = [1, 1]} : vector<8x96xf32> to vector<8x32xf32>
    %295 = vector.extract_strided_slice %290 {offsets = [0, 64], sizes = [8, 32], strides = [1, 1]} : vector<8x96xf32> to vector<8x32xf32>
    %296 = arith.mulf %294, %255 : vector<8x32xf32>
    %297 = arith.mulf %293, %292 : vector<8x32xf32>
    %298 = arith.addf %296, %297 : vector<8x32xf32>
    %299 = math.tanh %298 : vector<8x32xf32>
    %300 = arith.mulf %295, %299 : vector<8x32xf32>
    %301 = arith.truncf %300 : vector<8x32xf32> to vector<8x32xbf16>
    %cst_48 = arith.constant dense<0.000000e+00> : vector<8x128xf32>
    %302 = tpu.matmul %301, %9, %cst_48 {dimension_numbers = #tpu.dot_dimension_numbers<[1], [0], [0], [1], [0, 0, 1, 1], [], []>} : vector<8x32xbf16>, vector<32x128xbf16>, vector<8x128xf32> -> vector<8x128xf32>
    %c56 = arith.constant 56 : index
    %c0_49 = arith.constant 0 : index
    %303 = vector.load %arg9[%c56, %c0_49] : memref<64x128xf32, #tpu.memory_space<vmem>>, vector<8x128xf32>
    %304 = arith.addf %303, %280 : vector<8x128xf32>
    %305 = vector.extract_strided_slice %304 {offsets = [0, 0], sizes = [8, 96], strides = [1, 1]} : vector<8x128xf32> to vector<8x96xf32>
    %306 = arith.negf %305 : vector<8x96xf32>
    %307 = math.exp %306 : vector<8x96xf32>
    %cst_50 = arith.constant 1.000000e+00 : f32
    %308 = vector.broadcast %cst_50 : f32 to vector<8x96xf32>
    %309 = arith.addf %308, %307 : vector<8x96xf32>
    %310 = arith.divf %308, %309 : vector<8x96xf32>
    %311 = vector.extract_strided_slice %304 {offsets = [0, 96], sizes = [8, 32], strides = [1, 1]} : vector<8x128xf32> to vector<8x32xf32>
    %312 = math.tanh %311 : vector<8x32xf32>
    %313 = vector.extract_strided_slice %310 {offsets = [0, 0], sizes = [8, 32], strides = [1, 1]} : vector<8x96xf32> to vector<8x32xf32>
    %314 = vector.extract_strided_slice %310 {offsets = [0, 32], sizes = [8, 32], strides = [1, 1]} : vector<8x96xf32> to vector<8x32xf32>
    %315 = vector.extract_strided_slice %310 {offsets = [0, 64], sizes = [8, 32], strides = [1, 1]} : vector<8x96xf32> to vector<8x32xf32>
    %316 = arith.mulf %314, %275 : vector<8x32xf32>
    %317 = arith.mulf %313, %312 : vector<8x32xf32>
    %318 = arith.addf %316, %317 : vector<8x32xf32>
    %319 = math.tanh %318 : vector<8x32xf32>
    %320 = arith.mulf %315, %319 : vector<8x32xf32>
    %321 = arith.truncf %320 : vector<8x32xf32> to vector<8x32xbf16>
    %322 = vector.extract_strided_slice %7 {offsets = [0, 128], sizes = [32, 128], strides = [1, 1]} : vector<32x256xbf16> to vector<32x128xbf16>
    %cst_51 = arith.constant dense<0.000000e+00> : vector<8x128xf32>
    %323 = tpu.matmul %321, %322, %cst_51 {dimension_numbers = #tpu.dot_dimension_numbers<[1], [0], [0], [1], [0, 0, 1, 1], [], []>} : vector<8x32xbf16>, vector<32x128xbf16>, vector<8x128xf32> -> vector<8x128xf32>
    %324 = vector.broadcast %8 : vector<1x128xf32> to vector<8x128xf32>
    %325 = arith.addf %323, %324 : vector<8x128xf32>
    %326 = arith.addf %325, %302 : vector<8x128xf32>
    %327 = vector.extract_strided_slice %326 {offsets = [0, 0], sizes = [8, 96], strides = [1, 1]} : vector<8x128xf32> to vector<8x96xf32>
    %328 = arith.negf %327 : vector<8x96xf32>
    %329 = math.exp %328 : vector<8x96xf32>
    %cst_52 = arith.constant 1.000000e+00 : f32
    %330 = vector.broadcast %cst_52 : f32 to vector<8x96xf32>
    %331 = arith.addf %330, %329 : vector<8x96xf32>
    %332 = arith.divf %330, %331 : vector<8x96xf32>
    %333 = vector.extract_strided_slice %326 {offsets = [0, 96], sizes = [8, 32], strides = [1, 1]} : vector<8x128xf32> to vector<8x32xf32>
    %334 = math.tanh %333 : vector<8x32xf32>
    %335 = vector.extract_strided_slice %332 {offsets = [0, 0], sizes = [8, 32], strides = [1, 1]} : vector<8x96xf32> to vector<8x32xf32>
    %336 = vector.extract_strided_slice %332 {offsets = [0, 32], sizes = [8, 32], strides = [1, 1]} : vector<8x96xf32> to vector<8x32xf32>
    %337 = vector.extract_strided_slice %332 {offsets = [0, 64], sizes = [8, 32], strides = [1, 1]} : vector<8x96xf32> to vector<8x32xf32>
    %338 = arith.mulf %336, %298 : vector<8x32xf32>
    %339 = arith.mulf %335, %334 : vector<8x32xf32>
    %340 = arith.addf %338, %339 : vector<8x32xf32>
    %341 = math.tanh %340 : vector<8x32xf32>
    %342 = arith.mulf %337, %341 : vector<8x32xf32>
    %343 = arith.truncf %342 : vector<8x32xf32> to vector<8x32xbf16>
    %c0_53 = arith.constant 0 : index
    %c0_54 = arith.constant 0 : index
    %344 = vector.load %arg6[%c0_53, %c0_54] : memref<32x128xbf16, #tpu.memory_space<vmem>>, vector<32x128xbf16>
    %cst_55 = arith.constant dense<0.000000e+00> : vector<8x128xf32>
    %345 = tpu.matmul %343, %344, %cst_55 {dimension_numbers = #tpu.dot_dimension_numbers<[1], [0], [0], [1], [0, 0, 1, 1], [], []>} : vector<8x32xbf16>, vector<32x128xbf16>, vector<8x128xf32> -> vector<8x128xf32>
    %c0_56 = arith.constant 0 : index
    %c0_57 = arith.constant 0 : index
    %346 = vector.load %arg7[%c0_56, %c0_57] : memref<1x128xf32, #tpu.memory_space<vmem>>, vector<1x128xf32>
    %347 = vector.broadcast %346 : vector<1x128xf32> to vector<8x128xf32>
    %348 = arith.addf %345, %347 : vector<8x128xf32>
    %c0_58 = arith.constant 0 : index
    %c0_59 = arith.constant 0 : index
    %349 = vector.load %arg8[%c0_58, %c0_59] : memref<8x128xf32, #tpu.memory_space<vmem>>, vector<8x128xf32>
    tpu.vector_store %arg8[%c0_58, %c0_59], %348 {strides = array<i32>} : memref<8x128xf32, #tpu.memory_space<vmem>>, vector<8x128xf32>,
    return
  }
}

</mosaic_0001>

<bundles_post_ra>
// kernel: tpu_custom_call.1
= control target key start
LH: loop header
LB: loop body
LE: loop exit
PB: predicated region body
PF: predicated region fallthrough
CT: control target
= control target key end

     0   :  { %13 = vsyncpa [#allocation4], 0  ;;  %s1929_s0 = inlined_call_operand.vmem [shape: bf16[64,16], index: 0, kind: input, shape index: {}]   ;;  %s1930_s1 = inlined_call_operand.vmem [shape: bf16[16,128], index: 1, kind: input, shape index: {}]   ;;  %s1931_s2 = inlined_call_operand.vmem [shape: f32[1,128], index: 2, kind: input, shape index: {}]   ;;  %s1932_s3 = inlined_call_operand.vmem [shape: bf16[32,256], index: 3, kind: input, shape index: {}]   ;;  %s1933_s4 = inlined_call_operand.vmem [shape: f32[1,128], index: 4, kind: input, shape index: {}]   ;;  %s1934_s5 = inlined_call_operand.hbm [shape: bf16[32,128], index: 5, kind: input, shape index: {}]   ;;  %s1935_s6 = inlined_call_operand.hbm [shape: bf16[32,128], index: 6, kind: input, shape index: {}]   ;;  %s1936_s7 = inlined_call_operand.vmem [shape: f32[1,128], index: 7, kind: input, shape index: {}]   ;;  %s1937_s8 = inlined_call_operand.hbm [shape: f32[8,128], index: 8, kind: output, shape index: {}]  }
   0x1   :  { %14 = vsyncpa [#allocation7], 0 }
   0x2   :  { %15 = vsyncpa [#allocation5], 0  ;;  %s30_s29 = sshll.u32 %s1934_s5, 4  ;;  %s1590_s30 = smov [#allocation3]   ;;  %s31_s29 = int_to_ptr.hbm [resolvable:$true] %s30_s29 }
   0x3   :  { %s32_s9 = sshll.u32 %s1590_s30, 4  ;;  %s43_s12 = sshll.u32 %s1935_s6, 4  ;;  %s33_s9 = int_to_ptr.vmem [resolvable:$true] %s32_s9  ;;  %s44_s12 = int_to_ptr.hbm [resolvable:$true] %s43_s12 }
   0x4   :  { %s1591_s13 = smov 64   ;;  %s1592_s14 = smov 4  }
   0x5   :  { %38 = dma.hbm_to_vmem [thread:$0]  %s31_s29, 256, %s33_s9, [#allocation4], %s1591_s13, %s1591_s13, %s1592_s14  }
   0x6   :  { %s1593_s15 = smov [#allocation6]  }
   0x7   :  { %s45_s16 = sshll.u32 %s1593_s15, 4  ;;  %s46_s16 = int_to_ptr.vmem [resolvable:$true] %s45_s16 }
   0x8   :  { %51 = dma.hbm_to_vmem [thread:$0]  %s44_s12, 256, %s46_s16, [#allocation7], %s1591_s13, %s1591_s13, %s1592_s14  }
   0x9   :  { %1584 = dma.done.wait [#allocation4], 256  }
   0xa   :  { %1585 = vsyncadd [#allocation4], 4294967040 }
   0xb   :  { %1586 = dma.done.wait [#allocation7], 256  }
   0xc   :  { %1587 = vsyncadd [#allocation7], 4294967040  ;;  %v1364_v0 = vld [vmem:[%s1930_s1] sm:$0xff]  ;;  %vm103_vm0 = vcmask 130048   ;;  %s1594_s21 = smov 32   ;;  %vm218_vm5 = vcmask 261120  }
   0xd   :  { %v1360_v1 = vld [vmem:[%s1929_s0] sm:$0xff]  ;;  %123 = vmatpush.bf16.msra.mxu0 %v1364_v0  ;;  %v1300_v22 = vld [vmem:[%s1932_s3 + $0x10] sm:$0xf]  ;;  %v1368_v23 = vld [vmem:[%s1932_s3 + $0x14] sm:$0xf0]  ;;  %s1595_s24 = smov [#allocation8]  }
   0xe   :  { %v1661_v2 = vld [vmem:[%s1931_s2] ss:$0 sm:$0xff]  ;;  %v1367_v24 = vld [vmem:[%s1932_s3 + $0x14] sm:$0xf]  ;;  %v1676_v25 = vor.u32 %v1368_v23, %v1300_v22  ;;  %v1302_v26 = vld [vmem:[%s1932_s3 + $0x18] sm:$0xf0] }
   0xf   :  { %v1292_v27 = vld [vmem:[%s1932_s3] sm:$0xf]  ;;  %v1366_v28 = vld [vmem:[%s1932_s3 + $0x4] sm:$0xf0]  ;;  %v1687_v29 = vor.u32 %v1367_v24, %v1302_v26  ;;  %v1365_v30 = vld [vmem:[%s1932_s3 + $0x4] sm:$0xf] }
  0x10   :  { %1285 = vmatmul.msk.bf16.vlgmr.msra.gmra.mxu0 %vm103_vm0, %v1360_v1  ;;  %v1294_v31 = vld [vmem:[%s1932_s3 + $0x8] sm:$0xf0]  ;;  %228 = vmatpush.bf16.msra.mxu1 %v1676_v25  ;;  %v1696_v32 = vor.u32 %v1366_v28, %v1292_v27  ;;  %v1722_v42 = vld [vmem:[%s1933_s4] ss:$0 sm:$0xff]  ;;  %s1252_s25 = sshll.u32 %s1595_s24, 4  ;;  %s1254_s27 = sshll.u32 %s1937_s8, 4  ;;  %s1253_s25 = int_to_ptr.vmem [resolvable:$true] %s1252_s25  ;;  %s1255_s27 = int_to_ptr.hbm [resolvable:$true] %s1254_s27 }
  0x11   :  { %768 = vmatpush.bf16.msrb.mxu0 %v1676_v25  ;;  %241 = vmatpush.bf16.msra.mxu2 %v1687_v29  ;;  %v1700_v33 = vor.u32 %v1365_v30, %v1294_v31  ;;  %v1735_v26 = vld [vmem:[#allocation3 + $0x8] sm:$0xff]  ;;  %v1738_v27 = vld [vmem:[#allocation3] sm:$0xff] }
  0x12   :  { %308 = vmatpush.bf16.msra.mxu3 %v1735_v26  ;;  %v1361_v28 = vld [vmem:[%s1929_s0 + $0x8] sm:$0xff] }
  0x14   :  { %229 = vmatpush.bf16.msra.mxu1 %v1696_v32 }
  0x15   :  { %769 = vmatpush.bf16.msrb.mxu0 %v1696_v32  ;;  %242 = vmatpush.bf16.msra.mxu2 %v1700_v33 }
  0x16   :  { %309 = vmatpush.bf16.msra.mxu3 %v1738_v27 }
  0x18   :  { %371 = vmatpush.bf16.msrb.mxu1 %v1676_v25 }
  0x19   :  { %384 = vmatpush.bf16.msrb.mxu2 %v1687_v29  ;;  %912 = vmatpush.bf16.msra.mxu0 %v1687_v29 }
  0x1a   :  { %447 = vmatpush.bf16.msrb.mxu3 %v1735_v26 }
  0x1c   :  { %372 = vmatpush.bf16.msrb.mxu1 %v1696_v32 }
  0x1d   :  { %385 = vmatpush.bf16.msrb.mxu2 %v1700_v33  ;;  %913 = vmatpush.bf16.msra.mxu0 %v1700_v33 }
  0x1e   :  { %448 = vmatpush.bf16.msrb.mxu3 %v1738_v27 }
  0x20   :  { %1286 = vmatmul.msk.bf16.gmra.mxu0 %vm103_vm0, %v1361_v28 }
  0x8d   :  { %v125_v3 = vpop.f32.mrf.mxu0 }
  0x8e   :  { %v126_v4 = vadd.f32 %v1661_v2, %v125_v3 }
  0x90   :  { %1382 = vtanh.f32 %v126_v4  ;;  %v1289_v6 = vmul.f32 -1.442695, %v126_v4 }
  0x92   :  { %1384 = vpow2.f32 %v1289_v6 }
  0x95   :  { %v127_v38 = vpop.f32.mrf.mxu0 }
  0x96   :  { %v1383_v5 = vpop.eup %1382  ;;  %v128_v39 = vadd.f32 %v1661_v2, %v127_v38 }
  0x97   :  { %184 = vrot.lane.b32.xlu0 %v1383_v5, %s1594_s21 }
  0x98   :  { %v1385_v7 = vpop.eup %1384 }
  0x99   :  { %v166_v8 = vadd.f32 1.0, %v1385_v7 }
  0x9b   :  { %1386 = vrcp.f32 %v166_v8  ;;  %v178_v14 = vand.u32 2147483648, %v166_v8  ;;  %vm172_vm2 = vweird.f32 %v166_v8  ;;  %v176_v15 = vand.u32 2147483647, %v166_v8 }
  0x9d   :  { %v179_v17 = vor.u32 1.1754944e-38, %v178_v14  ;;  %vm177_vm4 = vcmp.eq.f32.partialorder %v176_v15, 8.507059e+37 }
  0xa1   :  { %v1387_v9 = vpop.eup %1386 }
  0xa2   :  { %v168_v10 = vmul.f32 %v1387_v9, %v166_v8  ;;  %vm173_vm1 = vweird.f32 %v1387_v9 }
  0xa3   :  { %vm174_vm3 = vmor %vm172_vm2, %vm173_vm1 }
  0xa4   :  { %v169_v11 = vsub.f32 1.0, %v168_v10 }
  0xa6   :  { %v170_v12 = vmul.f32 %v1387_v9, %v169_v11 }
  0xa8   :  { %v171_v13 = vadd.f32 %v1387_v9, %v170_v12 }
  0xaa   :  { %v175_v16 = vsel %vm174_vm3, %v1387_v9, %v171_v13 }
  0xab   :  { %v180_v19 = vsel %vm177_vm4, %v179_v17, %v175_v16 }
 0x109   :  { %v185_v18 = vpop.permute.xlu0 %184 }
 0x10a   :  { %v187_v20 = vmul.f32 %v185_v18, %v180_v19 }
 0x10c   :  { %1388 = vtanh.f32 %v187_v20  ;;  %338 = vrot.lane.b32.xlu2 %v187_v20, %s1594_s21 }
 0x112   :  { %v1389_v21 = vpop.eup %1388 }
 0x113   :  { %190 = vrot.lane.b32.xlu0 %v1389_v21, %s1591_s13 }
 0x166   :  { %v339_v17 = vpop.permute.xlu2 %338 }
 0x185   :  { %v191_v34 = vpop.permute.xlu0 %190 }
 0x186   :  { %v193_v35 = vmul.f32 %v191_v34, %v180_v19 }
 0x188   :  { %v194_v36 = vpack.c.bf16 %v193_v35, %v193_v35 }
 0x18a   :  { %196 = vrot.lane.b32.xlu1 %v194_v36, %s1591_s13 }
 0x1fc   :  { %v197_v37 = vpop.permute.xlu1 %196 }
 0x1fd   :  { %1306 = vmatmul.msk.bf16.vlgmr.msra.gmra.mxu1 %vm218_vm5, %v197_v37  ;;  %1307 = vmatmul.msk.bf16.vlgmr.msra.gmra.mxu2 %vm218_vm5, %v197_v37 }
 0x1fe   :  { %506 = vmatpush.bf16.msra.mxu1 %v1676_v25  ;;  %519 = vmatpush.bf16.msra.mxu2 %v1687_v29 }
 0x202   :  { %507 = vmatpush.bf16.msra.mxu1 %v1696_v32  ;;  %520 = vmatpush.bf16.msra.mxu2 %v1700_v33 }
 0x27a   :  { %v231_v40 = vpop.f32.mrf.mxu1 }
 0x27b   :  { %v316_v41 = vadd.f32 %v231_v40, %v128_v39  ;;  %v130_v39 = vpop.f32.mrf.mxu0 }
 0x27c   :  { %v131_v40 = vadd.f32 %v1661_v2, %v130_v39 }
 0x27d   :  { %1390 = vtanh.f32 %v316_v41  ;;  %v1318_v49 = vmul.f32 -1.442695, %v316_v41 }
 0x280   :  { %v244_v43 = vpop.f32.mrf.mxu2 }
 0x281   :  { %v251_v44 = vadd.f32 %v1722_v42, %v244_v43 }
 0x282   :  { %v233_v45 = vpop.f32.mrf.mxu1 }
 0x283   :  { %v1391_v46 = vpop.eup %1390  ;;  %1392 = vtanh.f32 %v251_v44  ;;  %v1308_v50 = vmul.f32 -1.442695, %v251_v44 }
 0x284   :  { %343 = vrot.lane.b32.xlu1 %v1391_v46, %s1594_s21  ;;  %1394 = vpow2.f32 %v1318_v49 }
 0x285   :  { %1396 = vpow2.f32 %v1308_v50 }
 0x288   :  { %v246_v47 = vpop.f32.mrf.mxu2 }
 0x289   :  { %v1393_v48 = vpop.eup %1392 }
 0x28a   :  { %273 = vrot.lane.b32.xlu0 %v1393_v48, %s1594_s21  ;;  %v1395_v51 = vpop.eup %1394 }
 0x28b   :  { %v320_v52 = vadd.f32 1.0, %v1395_v51  ;;  %v1397_v53 = vpop.eup %1396 }
 0x28c   :  { %v255_v54 = vadd.f32 1.0, %v1397_v53 }
 0x28d   :  { %1398 = vrcp.f32 %v320_v52  ;;  %v332_v63 = vand.u32 2147483648, %v320_v52  ;;  %vm326_vm7 = vweird.f32 %v320_v52  ;;  %v330_v0 = vand.u32 2147483647, %v320_v52 }
 0x28e   :  { %1400 = vrcp.f32 %v255_v54  ;;  %v267_v8 = vand.u32 2147483648, %v255_v54  ;;  %vm261_vm11 = vweird.f32 %v255_v54  ;;  %v265_v10 = vand.u32 2147483647, %v255_v54 }
 0x28f   :  { %v333_v4 = vor.u32 1.1754944e-38, %v332_v63  ;;  %vm331_vm9 = vcmp.eq.f32.partialorder %v330_v0, 8.507059e+37 }
 0x290   :  { %v268_v12 = vor.u32 1.1754944e-38, %v267_v8  ;;  %vm266_vm13 = vcmp.eq.f32.partialorder %v265_v10, 8.507059e+37 }
 0x293   :  { %v1399_v55 = vpop.eup %1398 }
 0x294   :  { %v322_v56 = vmul.f32 %v1399_v55, %v320_v52  ;;  %v1401_v57 = vpop.eup %1400  ;;  %vm327_vm6 = vweird.f32 %v1399_v55 }
 0x295   :  { %v257_v59 = vmul.f32 %v1401_v57, %v255_v54  ;;  %vm328_vm8 = vmor %vm326_vm7, %vm327_vm6  ;;  %vm262_vm10 = vweird.f32 %v1401_v57 }
 0x296   :  { %v323_v58 = vsub.f32 1.0, %v322_v56  ;;  %vm263_vm12 = vmor %vm261_vm11, %vm262_vm10 }
 0x297   :  { %v258_v61 = vsub.f32 1.0, %v257_v59 }
 0x298   :  { %v324_v60 = vmul.f32 %v1399_v55, %v323_v58 }
 0x299   :  { %v259_v1 = vmul.f32 %v1401_v57, %v258_v61 }
 0x29a   :  { %v325_v62 = vadd.f32 %v1399_v55, %v324_v60 }
 0x29b   :  { %v260_v5 = vadd.f32 %v1401_v57, %v259_v1 }
 0x29c   :  { %v329_v3 = vsel %vm328_vm8, %v1399_v55, %v325_v62 }
 0x29d   :  { %v334_v7 = vsel %vm331_vm9, %v333_v4, %v329_v3  ;;  %v264_v11 = vsel %vm263_vm12, %v1401_v57, %v260_v5 }
 0x29e   :  { %v269_v14 = vsel %vm266_vm13, %v268_v12, %v264_v11  ;;  %v341_v18 = vmul.f32 %v339_v17, %v334_v7 }
 0x2f6   :  { %v344_v6 = vpop.permute.xlu1 %343 }
 0x2f7   :  { %v346_v9 = vmul.f32 %v344_v6, %v334_v7 }
 0x2f9   :  { %348 = vrot.lane.b32.xlu2 %v346_v9, %s1594_s21 }
 0x2fc   :  { %v274_v13 = vpop.permute.xlu0 %273 }
 0x2fd   :  { %v276_v15 = vmul.f32 %v274_v13, %v269_v14 }
 0x2ff   :  { %1402 = vtanh.f32 %v276_v15 }
 0x305   :  { %v1403_v16 = vpop.eup %1402 }
 0x306   :  { %279 = vrot.lane.b32.xlu2 %v1403_v16, %s1591_s13 }
 0x353   :  { %v349_v19 = vpop.permute.xlu2 %348 }
 0x354   :  { %v1729_v20 = vadd.f32 %v349_v19, %v341_v18 }
 0x356   :  { %1404 = vtanh.f32 %v1729_v20 }
 0x35c   :  { %v1405_v21 = vpop.eup %1404 }
 0x35d   :  { %354 = vrot.lane.b32.xlu1 %v1405_v21, %s1594_s21 }
 0x360   :  { %v280_v22 = vpop.permute.xlu2 %279 }
 0x361   :  { %v282_v23 = vmul.f32 %v280_v22, %v269_v14 }
 0x363   :  { %v283_v24 = vpack.c.bf16 %v282_v23, %v282_v23 }
 0x365   :  { %285 = vrot.lane.b32.xlu1 %v283_v24, %s1591_s13 }
 0x36d   :  { %414 = vrot.lane.b32.xlu1 %v276_v15, %s1594_s21 }
 0x3cf   :  { %v355_v30 = vpop.permute.xlu1 %354 }
 0x3d0   :  { %v357_v31 = vmul.f32 %v355_v30, %v334_v7 }
 0x3d2   :  { %v358_v34 = vpack.c.bf16 %v357_v31, %v357_v31 }
 0x3d4   :  { %360 = vrot.lane.b32.xlu0 %v358_v34, %s1591_s13 }
 0x3d7   :  { %v286_v35 = vpop.permute.xlu1 %285 }
 0x3d8   :  { %1317 = vmatmul.msk.bf16.vlgmr.msra.gmra.mxu3 %vm218_vm5, %v286_v35 }
 0x3d9   :  { %578 = vmatpush.bf16.msra.mxu3 %v1735_v26 }
 0x3dd   :  { %579 = vmatpush.bf16.msra.mxu3 %v1738_v27 }
 0x3df   :  { %v415_v23 = vpop.permute.xlu1 %414 }
 0x446   :  { %v361_v36 = vpop.permute.xlu0 %360 }
 0x447   :  { %1319 = vmatmul.msk.bf16.vlgmr.msrb.gmra.mxu1 %vm218_vm5, %v361_v36  ;;  %1320 = vmatmul.msk.bf16.vlgmr.msrb.gmra.mxu2 %vm218_vm5, %v361_v36 }
 0x448   :  { %637 = vmatpush.bf16.msrb.mxu1 %v1676_v25  ;;  %650 = vmatpush.bf16.msrb.mxu2 %v1687_v29 }
 0x44c   :  { %638 = vmatpush.bf16.msrb.mxu1 %v1696_v32  ;;  %651 = vmatpush.bf16.msrb.mxu2 %v1700_v33 }
 0x45b   :  { %v311_v37 = vpop.f32.mrf.mxu3 }
 0x463   :  { %v313_v38 = vpop.f32.mrf.mxu3 }
 0x4c4   :  { %v374_v41 = vpop.f32.mrf.mxu1 }
 0x4c5   :  { %v455_v43 = vadd.f32 %v374_v41, %v131_v40  ;;  %v132_v41 = vpop.f32.mrf.mxu0 }
 0x4c7   :  { %1406 = vtanh.f32 %v455_v43  ;;  %v1323_v51 = vmul.f32 -1.442695, %v455_v43  ;;  %v133_v43 = vadd.f32 %v1661_v2, %v132_v41 }
 0x4ca   :  { %v387_v44 = vpop.f32.mrf.mxu2 }
 0x4cb   :  { %v391_v45 = vadd.f32 %v1722_v42, %v387_v44 }
 0x4cc   :  { %v376_v46 = vpop.f32.mrf.mxu1 }
 0x4cd   :  { %v1407_v47 = vpop.eup %1406  ;;  %v392_v48 = vadd.f32 %v391_v45, %v311_v37 }
 0x4ce   :  { %478 = vrot.lane.b32.xlu2 %v1407_v47, %s1594_s21 }
 0x4cf   :  { %1408 = vtanh.f32 %v392_v48  ;;  %v1321_v57 = vmul.f32 -1.442695, %v392_v48 }
 0x4d0   :  { %1410 = vpow2.f32 %v1323_v51 }
 0x4d2   :  { %v389_v49 = vpop.f32.mrf.mxu2 }
 0x4d5   :  { %v1409_v50 = vpop.eup %1408 }
 0x4d6   :  { %419 = vrot.lane.b32.xlu0 %v1409_v50, %s1594_s21  ;;  %v1411_v52 = vpop.eup %1410 }
 0x4d7   :  { %v459_v53 = vadd.f32 1.0, %v1411_v52 }
 0x4d9   :  { %1412 = vrcp.f32 %v459_v53  ;;  %v471_v60 = vand.u32 2147483648, %v459_v53  ;;  %vm465_vm15 = vweird.f32 %v459_v53  ;;  %v469_v61 = vand.u32 2147483647, %v459_v53 }
 0x4da   :  { %1414 = vpow2.f32 %v1321_v57 }
 0x4db   :  { %v472_v0 = vor.u32 1.1754944e-38, %v471_v60  ;;  %vm470_vm2 = vcmp.eq.f32.partialorder %v469_v61, 8.507059e+37 }
 0x4df   :  { %v1413_v54 = vpop.eup %1412 }
 0x4e0   :  { %v461_v55 = vmul.f32 %v1413_v54, %v459_v53  ;;  %vm466_vm14 = vweird.f32 %v1413_v54  ;;  %v1415_v62 = vpop.eup %1414 }
 0x4e1   :  { %vm467_vm1 = vmor %vm465_vm15, %vm466_vm14  ;;  %v396_v1 = vadd.f32 1.0, %v1415_v62 }
 0x4e2   :  { %v462_v56 = vsub.f32 1.0, %v461_v55 }
 0x4e3   :  { %1416 = vrcp.f32 %v396_v1  ;;  %v408_v11 = vand.u32 2147483648, %v396_v1  ;;  %vm402_vm4 = vweird.f32 %v396_v1  ;;  %v406_v12 = vand.u32 2147483647, %v396_v1 }
 0x4e4   :  { %v463_v58 = vmul.f32 %v1413_v54, %v462_v56 }
 0x4e5   :  { %v409_v14 = vor.u32 1.1754944e-38, %v408_v11  ;;  %vm407_vm7 = vcmp.eq.f32.partialorder %v406_v12, 8.507059e+37 }
 0x4e6   :  { %v464_v59 = vadd.f32 %v1413_v54, %v463_v58 }
 0x4e8   :  { %v468_v63 = vsel %vm467_vm1, %v1413_v54, %v464_v59 }
 0x4e9   :  { %v473_v4 = vsel %vm470_vm2, %v472_v0, %v468_v63  ;;  %v1417_v6 = vpop.eup %1416 }
 0x4ea   :  { %v398_v7 = vmul.f32 %v1417_v6, %v396_v1  ;;  %vm403_vm3 = vweird.f32 %v1417_v6  ;;  %v476_v18 = vmul.f32 %v473_v4, %v1729_v20 }
 0x4eb   :  { %vm404_vm6 = vmor %vm402_vm4, %vm403_vm3 }
 0x4ec   :  { %v399_v8 = vsub.f32 1.0, %v398_v7 }
 0x4ee   :  { %v400_v9 = vmul.f32 %v1417_v6, %v399_v8 }
 0x4f0   :  { %v401_v10 = vadd.f32 %v1417_v6, %v400_v9 }
 0x4f2   :  { %v405_v13 = vsel %vm404_vm6, %v1417_v6, %v401_v10 }
 0x4f3   :  { %v410_v16 = vsel %vm407_vm7, %v409_v14, %v405_v13 }
 0x4f4   :  { %v417_v24 = vmul.f32 %v415_v23, %v410_v16 }
 0x528   :  { %v479_v3 = vpop.permute.xlu2 %478 }
 0x529   :  { %v481_v5 = vmul.f32 %v479_v3, %v473_v4 }
 0x52b   :  { %483 = vrot.lane.b32.xlu2 %v481_v5, %s1594_s21 }
 0x548   :  { %v420_v15 = vpop.permute.xlu0 %419 }
 0x549   :  { %v422_v17 = vmul.f32 %v420_v15, %v410_v16 }
 0x54b   :  { %424 = vrot.lane.b32.xlu0 %v422_v17, %s1594_s21 }
 0x585   :  { %v484_v19 = vpop.permute.xlu2 %483 }
 0x586   :  { %v1764_v21 = vadd.f32 %v484_v19, %v476_v18 }
 0x588   :  { %1418 = vtanh.f32 %v1764_v21 }
 0x58e   :  { %v1419_v22 = vpop.eup %1418 }
 0x58f   :  { %489 = vrot.lane.b32.xlu1 %v1419_v22, %s1594_s21 }
 0x5bd   :  { %v425_v28 = vpop.permute.xlu0 %424 }
 0x5be   :  { %v1768_v30 = vadd.f32 %v425_v28, %v417_v24 }
 0x5c0   :  { %1420 = vtanh.f32 %v1768_v30 }
 0x5c6   :  { %v1421_v31 = vpop.eup %1420 }
 0x5c7   :  { %430 = vrot.lane.b32.xlu2 %v1421_v31, %s1594_s21 }
 0x601   :  { %v490_v34 = vpop.permute.xlu1 %489 }
 0x602   :  { %v492_v20 = vmul.f32 %v490_v34, %v473_v4 }
 0x604   :  { %v493_v35 = vpack.c.bf16 %v492_v20, %v492_v20 }
 0x606   :  { %495 = vrot.lane.b32.xlu0 %v493_v35, %s1591_s13 }
 0x621   :  { %v431_v36 = vpop.permute.xlu2 %430 }
 0x622   :  { %v433_v37 = vmul.f32 %v431_v36, %v410_v16 }
 0x624   :  { %v434_v38 = vpack.c.bf16 %v433_v37, %v433_v37 }
 0x626   :  { %436 = vrot.lane.b32.xlu1 %v434_v38, %s1591_s13 }
 0x678   :  { %v496_v39 = vpop.permute.xlu0 %495 }
 0x679   :  { %1324 = vmatmul.msk.bf16.vlgmr.msra.gmra.mxu1 %vm218_vm5, %v496_v39  ;;  %1325 = vmatmul.msk.bf16.vlgmr.msra.gmra.mxu2 %vm218_vm5, %v496_v39 }
 0x67a   :  { %781 = vmatpush.bf16.msra.mxu1 %v1687_v29  ;;  %840 = vmatpush.bf16.msra.mxu2 %v1735_v26 }
 0x67e   :  { %782 = vmatpush.bf16.msra.mxu1 %v1700_v33  ;;  %841 = vmatpush.bf16.msra.mxu2 %v1738_v27 }
 0x698   :  { %v437_v40 = vpop.permute.xlu1 %436 }
 0x699   :  { %1322 = vmatmul.msk.bf16.vlgmr.msrb.gmra.mxu3 %vm218_vm5, %v437_v40  ;;  %v1362_v40 = vld [vmem:[%s1929_s0 + $0x10] sm:$0xff] }
 0x69a   :  { %709 = vmatpush.bf16.msrb.mxu3 %v1735_v26  ;;  %1287 = vmatmul.msk.bf16.gmra.mxu0 %vm103_vm0, %v1362_v40 }
 0x69e   :  { %710 = vmatpush.bf16.msrb.mxu3 %v1738_v27 }
 0x6f6   :  { %v509_v44 = vpop.f32.mrf.mxu1 }
 0x6f7   :  { %v586_v45 = vadd.f32 %v509_v44, %v133_v43 }
 0x6f9   :  { %1422 = vtanh.f32 %v586_v45  ;;  %v1328_v55 = vmul.f32 -1.442695, %v586_v45 }
 0x6fc   :  { %v522_v46 = vpop.f32.mrf.mxu2 }
 0x6fd   :  { %v526_v50 = vadd.f32 %v1722_v42, %v522_v46 }
 0x6fe   :  { %v511_v47 = vpop.f32.mrf.mxu1 }
 0x6ff   :  { %v1423_v48 = vpop.eup %1422 }
 0x700   :  { %609 = vrot.lane.b32.xlu2 %v1423_v48, %s1594_s21 }
 0x704   :  { %v524_v49 = vpop.f32.mrf.mxu2 }
 0x717   :  { %v135_v46 = vpop.f32.mrf.mxu0 }
 0x718   :  { %v136_v47 = vadd.f32 %v1661_v2, %v135_v46 }
 0x71c   :  { %v450_v51 = vpop.f32.mrf.mxu3 }
 0x71d   :  { %v527_v52 = vadd.f32 %v526_v50, %v450_v51 }
 0x71f   :  { %1424 = vtanh.f32 %v527_v52  ;;  %v1326_v7 = vmul.f32 -1.442695, %v527_v52 }
 0x720   :  { %1426 = vpow2.f32 %v1328_v55 }
 0x724   :  { %v452_v53 = vpop.f32.mrf.mxu3 }
 0x725   :  { %v1425_v54 = vpop.eup %1424 }
 0x726   :  { %550 = vrot.lane.b32.xlu0 %v1425_v54, %s1594_s21  ;;  %v1427_v56 = vpop.eup %1426 }
 0x727   :  { %v590_v57 = vadd.f32 1.0, %v1427_v56 }
 0x729   :  { %1428 = vrcp.f32 %v590_v57  ;;  %v602_v63 = vand.u32 2147483648, %v590_v57  ;;  %vm596_vm9 = vweird.f32 %v590_v57  ;;  %v600_v0 = vand.u32 2147483647, %v590_v57 }
 0x72a   :  { %1430 = vpow2.f32 %v1326_v7 }
 0x72b   :  { %v603_v3 = vor.u32 1.1754944e-38, %v602_v63  ;;  %vm601_vm11 = vcmp.eq.f32.partialorder %v600_v0, 8.507059e+37 }
 0x72f   :  { %v1429_v58 = vpop.eup %1428 }
 0x730   :  { %v592_v59 = vmul.f32 %v1429_v58, %v590_v57  ;;  %vm597_vm8 = vweird.f32 %v1429_v58  ;;  %v1431_v8 = vpop.eup %1430 }
 0x731   :  { %vm598_vm10 = vmor %vm596_vm9, %vm597_vm8  ;;  %v531_v9 = vadd.f32 1.0, %v1431_v8 }
 0x732   :  { %v593_v60 = vsub.f32 1.0, %v592_v59 }
 0x733   :  { %1432 = vrcp.f32 %v531_v9  ;;  %v543_v15 = vand.u32 2147483648, %v531_v9  ;;  %vm537_vm13 = vweird.f32 %v531_v9  ;;  %v541_v16 = vand.u32 2147483647, %v531_v9 }
 0x734   :  { %v594_v61 = vmul.f32 %v1429_v58, %v593_v60 }
 0x735   :  { %v544_v18 = vor.u32 1.1754944e-38, %v543_v15  ;;  %vm542_vm15 = vcmp.eq.f32.partialorder %v541_v16, 8.507059e+37 }
 0x736   :  { %v595_v62 = vadd.f32 %v1429_v58, %v594_v61 }
 0x738   :  { %v599_v1 = vsel %vm598_vm10, %v1429_v58, %v595_v62 }
 0x739   :  { %v604_v5 = vsel %vm601_vm11, %v603_v3, %v599_v1  ;;  %v1433_v10 = vpop.eup %1432 }
 0x73a   :  { %v533_v11 = vmul.f32 %v1433_v10, %v531_v9  ;;  %vm538_vm12 = vweird.f32 %v1433_v10  ;;  %v607_v24 = vmul.f32 %v604_v5, %v1764_v21 }
 0x73b   :  { %vm539_vm14 = vmor %vm537_vm13, %vm538_vm12 }
 0x73c   :  { %v534_v12 = vsub.f32 1.0, %v533_v11 }
 0x73e   :  { %v535_v13 = vmul.f32 %v1433_v10, %v534_v12 }
 0x740   :  { %v536_v14 = vadd.f32 %v1433_v10, %v535_v13 }
 0x742   :  { %v540_v17 = vsel %vm539_vm14, %v1433_v10, %v536_v14 }
 0x743   :  { %v545_v22 = vsel %vm542_vm15, %v544_v18, %v540_v17 }
 0x744   :  { %v548_v20 = vmul.f32 %v545_v22, %v1768_v30 }
 0x75a   :  { %v610_v4 = vpop.permute.xlu2 %609 }
 0x75b   :  { %v612_v6 = vmul.f32 %v610_v4, %v604_v5 }
 0x75d   :  { %614 = vrot.lane.b32.xlu1 %v612_v6, %s1594_s21 }
 0x798   :  { %v551_v19 = vpop.permute.xlu0 %550 }
 0x799   :  { %v553_v23 = vmul.f32 %v551_v19, %v545_v22 }
 0x79b   :  { %555 = vrot.lane.b32.xlu2 %v553_v23, %s1594_s21 }
 0x7cf   :  { %v615_v28 = vpop.permute.xlu1 %614 }
 0x7d0   :  { %v1790_v31 = vadd.f32 %v615_v28, %v607_v24 }
 0x7d2   :  { %1434 = vtanh.f32 %v1790_v31 }
 0x7d8   :  { %v1435_v34 = vpop.eup %1434 }
 0x7d9   :  { %620 = vrot.lane.b32.xlu0 %v1435_v34, %s1594_s21 }
 0x7f5   :  { %v556_v35 = vpop.permute.xlu2 %555 }
 0x7f6   :  { %v1795_v36 = vadd.f32 %v556_v35, %v548_v20 }
 0x7f8   :  { %1436 = vtanh.f32 %v1795_v36 }
 0x7fe   :  { %v1437_v37 = vpop.eup %1436 }
 0x7ff   :  { %561 = vrot.lane.b32.xlu1 %v1437_v37, %s1594_s21 }
 0x84b   :  { %v621_v38 = vpop.permute.xlu0 %620 }
 0x84c   :  { %v623_v21 = vmul.f32 %v621_v38, %v604_v5 }
 0x84e   :  { %v624_v39 = vpack.c.bf16 %v623_v21, %v623_v21 }
 0x850   :  { %626 = vrot.lane.b32.xlu2 %v624_v39, %s1591_s13 }
 0x871   :  { %v562_v30 = vpop.permute.xlu1 %561 }
 0x872   :  { %v564_v41 = vmul.f32 %v562_v30, %v545_v22 }
 0x874   :  { %v565_v43 = vpack.c.bf16 %v564_v41, %v564_v41 }
 0x876   :  { %567 = vrot.lane.b32.xlu0 %v565_v43, %s1591_s13  ;;  %v1363_v43 = vld [vmem:[%s1929_s0 + $0x18] sm:$0xff] }
 0x877   :  { %1288 = vmatmul.msk.bf16.gmra.mxu0 %vm103_vm0, %v1363_v43 }
 0x8aa   :  { %v627_v44 = vpop.permute.xlu2 %626 }
 0x8ab   :  { %1329 = vmatmul.msk.bf16.vlgmr.msrb.gmra.mxu1 %vm218_vm5, %v627_v44  ;;  %1330 = vmatmul.msk.bf16.vlgmr.msrb.gmra.mxu2 %vm218_vm5, %v627_v44 }
 0x8ac   :  { %1030 = vmatpush.bf16.msrb.mxu2 %v1676_v25  ;;  %971 = vmatpush.bf16.msrb.mxu1 %v1735_v26 }
 0x8b0   :  { %1031 = vmatpush.bf16.msrb.mxu2 %v1696_v32  ;;  %972 = vmatpush.bf16.msrb.mxu1 %v1738_v27 }
 0x8e8   :  { %v568_v45 = vpop.permute.xlu0 %567 }
 0x8e9   :  { %1327 = vmatmul.msk.bf16.vlgmr.msra.gmra.mxu3 %vm218_vm5, %v568_v45 }
 0x8ea   :  { %899 = vmatpush.bf16.msra.mxu3 %v1676_v25 }
 0x8ee   :  { %900 = vmatpush.bf16.msra.mxu3 %v1696_v32 }
 0x928   :  { %v640_v48 = vpop.f32.mrf.mxu1 }
 0x929   :  { %v717_v49 = vadd.f32 %v640_v48, %v136_v47  ;;  %v137_v48 = vpop.f32.mrf.mxu0 }
 0x92b   :  { %1438 = vtanh.f32 %v717_v49  ;;  %v1333_v32 = vmul.f32 -1.442695, %v717_v49 }
 0x92e   :  { %v653_v50 = vpop.f32.mrf.mxu2 }
 0x92f   :  { %v657_v54 = vadd.f32 %v1722_v42, %v653_v50 }
 0x930   :  { %v642_v51 = vpop.f32.mrf.mxu1 }
 0x931   :  { %v1439_v52 = vpop.eup %1438  ;;  %v1845_v49 = vpop.f32.mrf.mxu0  ;;  %v138_v51 = vadd.f32 %v1661_v2, %v137_v48 }
 0x932   :  { %740 = vrot.lane.b32.xlu1 %v1439_v52, %s1594_s21 }
 0x936   :  { %v655_v53 = vpop.f32.mrf.mxu2 }
 0x939   :  { %v1847_v50 = vpop.f32.mrf.mxu0 }
 0x96c   :  { %v581_v55 = vpop.f32.mrf.mxu3 }
 0x96d   :  { %v658_v56 = vadd.f32 %v657_v54, %v581_v55 }
 0x96f   :  { %1440 = vtanh.f32 %v658_v56  ;;  %v1331_v6 = vmul.f32 -1.442695, %v658_v56 }
 0x970   :  { %1442 = vpow2.f32 %v1333_v32 }
 0x974   :  { %v583_v25 = vpop.f32.mrf.mxu3 }
 0x975   :  { %v1441_v57 = vpop.eup %1440 }
 0x976   :  { %681 = vrot.lane.b32.xlu2 %v1441_v57, %s1594_s21  ;;  %v1443_v58 = vpop.eup %1442 }
 0x977   :  { %v721_v59 = vadd.f32 1.0, %v1443_v58 }
 0x979   :  { %1444 = vrcp.f32 %v721_v59  ;;  %v733_v1 = vand.u32 2147483648, %v721_v59  ;;  %vm727_vm2 = vweird.f32 %v721_v59  ;;  %v731_v3 = vand.u32 2147483647, %v721_v59 }
 0x97a   :  { %1446 = vpow2.f32 %v1331_v6 }
 0x97b   :  { %v734_v5 = vor.u32 1.1754944e-38, %v733_v1  ;;  %vm732_vm4 = vcmp.eq.f32.partialorder %v731_v3, 8.507059e+37 }
 0x97f   :  { %v1445_v60 = vpop.eup %1444 }
 0x980   :  { %v723_v61 = vmul.f32 %v1445_v60, %v721_v59  ;;  %vm728_vm1 = vweird.f32 %v1445_v60  ;;  %v1447_v10 = vpop.eup %1446 }
 0x981   :  { %vm729_vm3 = vmor %vm727_vm2, %vm728_vm1  ;;  %v662_v11 = vadd.f32 1.0, %v1447_v10 }
 0x982   :  { %v724_v62 = vsub.f32 1.0, %v723_v61 }
 0x983   :  { %1448 = vrcp.f32 %v662_v11  ;;  %v674_v17 = vand.u32 2147483648, %v662_v11  ;;  %vm668_vm7 = vweird.f32 %v662_v11  ;;  %v672_v18 = vand.u32 2147483647, %v662_v11 }
 0x984   :  { %v725_v63 = vmul.f32 %v1445_v60, %v724_v62 }
 0x985   :  { %v675_v22 = vor.u32 1.1754944e-38, %v674_v17  ;;  %vm673_vm9 = vcmp.eq.f32.partialorder %v672_v18, 8.507059e+37 }
 0x986   :  { %v726_v0 = vadd.f32 %v1445_v60, %v725_v63 }
 0x988   :  { %v730_v4 = vsel %vm729_vm3, %v1445_v60, %v726_v0 }
 0x989   :  { %v735_v8 = vsel %vm732_vm4, %v734_v5, %v730_v4  ;;  %v1449_v12 = vpop.eup %1448 }
 0x98a   :  { %v664_v13 = vmul.f32 %v1449_v12, %v662_v11  ;;  %vm669_vm6 = vweird.f32 %v1449_v12  ;;  %v738_v34 = vmul.f32 %v735_v8, %v1790_v31 }
 0x98b   :  { %vm670_vm8 = vmor %vm668_vm7, %vm669_vm6 }
 0x98c   :  { %v665_v14 = vsub.f32 1.0, %v664_v13 }
 0x98e   :  { %v666_v15 = vmul.f32 %v1449_v12, %v665_v14 }
 0x990   :  { %v667_v16 = vadd.f32 %v1449_v12, %v666_v15 }
 0x992   :  { %v671_v19 = vsel %vm670_vm8, %v1449_v12, %v667_v16 }
 0x993   :  { %v676_v24 = vsel %vm673_vm9, %v675_v22, %v671_v19 }
 0x994   :  { %v679_v38 = vmul.f32 %v676_v24, %v1795_v36 }
 0x9a4   :  { %v741_v7 = vpop.permute.xlu1 %740 }
 0x9a5   :  { %v743_v9 = vmul.f32 %v741_v7, %v735_v8 }
 0x9a7   :  { %745 = vrot.lane.b32.xlu0 %v743_v9, %s1594_s21 }
 0x9d0   :  { %v682_v23 = vpop.permute.xlu2 %681 }
 0x9d1   :  { %v684_v28 = vmul.f32 %v682_v23, %v676_v24 }
 0x9d3   :  { %686 = vrot.lane.b32.xlu1 %v684_v28, %s1594_s21 }
 0xa19   :  { %v746_v20 = vpop.permute.xlu0 %745 }
 0xa1a   :  { %v1821_v35 = vadd.f32 %v746_v20, %v738_v34 }
 0xa1c   :  { %1450 = vtanh.f32 %v1821_v35 }
 0xa22   :  { %v1451_v37 = vpop.eup %1450 }
 0xa23   :  { %751 = vrot.lane.b32.xlu2 %v1451_v37, %s1594_s21 }
 0xa45   :  { %v687_v21 = vpop.permute.xlu1 %686 }
 0xa46   :  { %v1826_v39 = vadd.f32 %v687_v21, %v679_v38 }
 0xa48   :  { %1452 = vtanh.f32 %v1826_v39 }
 0xa4e   :  { %v1453_v40 = vpop.eup %1452 }
 0xa4f   :  { %692 = vrot.lane.b32.xlu0 %v1453_v40, %s1594_s21 }
 0xa7d   :  { %v752_v30 = vpop.permute.xlu2 %751 }
 0xa7e   :  { %v754_v31 = vmul.f32 %v752_v30, %v735_v8 }
 0xa80   :  { %v755_v41 = vpack.c.bf16 %v754_v31, %v754_v31 }
 0xa82   :  { %757 = vrot.lane.b32.xlu1 %v755_v41, %s1591_s13 }
 0xac1   :  { %v693_v36 = vpop.permute.xlu0 %692 }
 0xac2   :  { %v695_v44 = vmul.f32 %v693_v36, %v676_v24 }
 0xac4   :  { %v696_v45 = vpack.c.bf16 %v695_v44, %v695_v44 }
 0xac6   :  { %698 = vrot.lane.b32.xlu2 %v696_v45, %s1591_s13 }
 0xaf4   :  { %v758_v46 = vpop.permute.xlu1 %757 }
 0xaf5   :  { %1334 = vmatmul.msk.bf16.vlgmr.msrb.gmra.mxu0 %vm218_vm5, %v758_v46  ;;  %1335 = vmatmul.msk.bf16.vlgmr.msra.gmra.mxu1 %vm218_vm5, %v758_v46 }
 0xaf6   :  { %1161 = vmatpush.bf16.msra.mxu1 %v1687_v29  ;;  %1102 = vmatpush.bf16.msrb.mxu0 %v1735_v26 }
 0xafa   :  { %1162 = vmatpush.bf16.msra.mxu1 %v1700_v33  ;;  %1103 = vmatpush.bf16.msrb.mxu0 %v1738_v27 }
 0xb20   :  { %v699_v47 = vpop.permute.xlu2 %698 }
 0xb21   :  { %1332 = vmatmul.msk.bf16.vlgmr.msrb.gmra.mxu3 %vm218_vm5, %v699_v47  ;;  %v1873_v47 = vld [vmem:[%s1931_s2] ss:$0 sm:$0xff] }
 0xb22   :  { %1043 = vmatpush.bf16.msrb.mxu3 %v1687_v29  ;;  %v141_v48 = vadd.f32 %v1873_v47, %v1845_v49 }
 0xb26   :  { %1044 = vmatpush.bf16.msrb.mxu3 %v1700_v33 }
 0xb72   :  { %v771_v52 = vpop.f32.mrf.mxu0  ;;  %v784_v26 = vpop.f32.mrf.mxu1 }
 0xb73   :  { %v848_v53 = vadd.f32 %v771_v52, %v138_v51  ;;  %v788_v29 = vadd.f32 %v1722_v42, %v784_v26 }
 0xb75   :  { %1454 = vtanh.f32 %v848_v53  ;;  %v1338_v32 = vmul.f32 -1.442695, %v848_v53 }
 0xb7a   :  { %v773_v54 = vpop.f32.mrf.mxu0  ;;  %v786_v27 = vpop.f32.mrf.mxu1 }
 0xb7b   :  { %v1455_v55 = vpop.eup %1454 }
 0xb7c   :  { %871 = vrot.lane.b32.xlu0 %v1455_v55, %s1594_s21 }
 0xba4   :  { %v712_v56 = vpop.f32.mrf.mxu3 }
 0xba5   :  { %v789_v33 = vadd.f32 %v788_v29, %v712_v56 }
 0xba7   :  { %1456 = vtanh.f32 %v789_v33  ;;  %v1336_v8 = vmul.f32 -1.442695, %v789_v33 }
 0xba8   :  { %1458 = vpow2.f32 %v1338_v32 }
 0xbac   :  { %v714_v25 = vpop.f32.mrf.mxu3 }
 0xbad   :  { %v1457_v57 = vpop.eup %1456 }
 0xbae   :  { %812 = vrot.lane.b32.xlu1 %v1457_v57, %s1594_s21  ;;  %v1459_v2 = vpop.eup %1458 }
 0xbaf   :  { %v852_v58 = vadd.f32 1.0, %v1459_v2 }
 0xbb1   :  { %1460 = vrcp.f32 %v852_v58  ;;  %v864_v0 = vand.u32 2147483648, %v852_v58  ;;  %vm858_vm10 = vweird.f32 %v852_v58  ;;  %v862_v1 = vand.u32 2147483647, %v852_v58 }
 0xbb2   :  { %1462 = vpow2.f32 %v1336_v8 }
 0xbb3   :  { %v865_v4 = vor.u32 1.1754944e-38, %v864_v0  ;;  %vm863_vm12 = vcmp.eq.f32.partialorder %v862_v1, 8.507059e+37 }
 0xbb7   :  { %v1461_v59 = vpop.eup %1460 }
 0xbb8   :  { %v854_v60 = vmul.f32 %v1461_v59, %v852_v58  ;;  %vm859_vm0 = vweird.f32 %v1461_v59  ;;  %v1463_v9 = vpop.eup %1462 }
 0xbb9   :  { %vm860_vm11 = vmor %vm858_vm10, %vm859_vm0  ;;  %v793_v10 = vadd.f32 1.0, %v1463_v9 }
 0xbba   :  { %v855_v61 = vsub.f32 1.0, %v854_v60 }
 0xbbb   :  { %1464 = vrcp.f32 %v793_v10  ;;  %v805_v16 = vand.u32 2147483648, %v793_v10  ;;  %vm799_vm14 = vweird.f32 %v793_v10  ;;  %v803_v17 = vand.u32 2147483647, %v793_v10 }
 0xbbc   :  { %v856_v62 = vmul.f32 %v1461_v59, %v855_v61 }
 0xbbd   :  { %v806_v19 = vor.u32 1.1754944e-38, %v805_v16  ;;  %vm804_vm1 = vcmp.eq.f32.partialorder %v803_v17, 8.507059e+37 }
 0xbbe   :  { %v857_v63 = vadd.f32 %v1461_v59, %v856_v62 }
 0xbc0   :  { %v861_v3 = vsel %vm860_vm11, %v1461_v59, %v857_v63 }
 0xbc1   :  { %v866_v6 = vsel %vm863_vm12, %v865_v4, %v861_v3  ;;  %v1465_v11 = vpop.eup %1464 }
 0xbc2   :  { %v795_v12 = vmul.f32 %v1465_v11, %v793_v10  ;;  %vm800_vm13 = vweird.f32 %v1465_v11  ;;  %v869_v28 = vmul.f32 %v866_v6, %v1821_v35 }
 0xbc3   :  { %vm801_vm15 = vmor %vm799_vm14, %vm800_vm13 }
 0xbc4   :  { %v796_v13 = vsub.f32 1.0, %v795_v12 }
 0xbc6   :  { %v797_v14 = vmul.f32 %v1465_v11, %v796_v13 }
 0xbc8   :  { %v798_v15 = vadd.f32 %v1465_v11, %v797_v14 }
 0xbca   :  { %v802_v18 = vsel %vm801_vm15, %v1465_v11, %v798_v15 }
 0xbcb   :  { %v807_v23 = vsel %vm804_vm1, %v806_v19, %v802_v18 }
 0xbcc   :  { %v810_v38 = vmul.f32 %v807_v23, %v1826_v39 }
 0xbee   :  { %v872_v5 = vpop.permute.xlu0 %871 }
 0xbef   :  { %v874_v7 = vmul.f32 %v872_v5, %v866_v6 }
 0xbf1   :  { %876 = vrot.lane.b32.xlu2 %v874_v7, %s1594_s21 }
 0xc20   :  { %v813_v22 = vpop.permute.xlu1 %812 }
 0xc21   :  { %v815_v24 = vmul.f32 %v813_v22, %v807_v23 }
 0xc23   :  { %817 = vrot.lane.b32.xlu0 %v815_v24, %s1594_s21 }
 0xc4b   :  { %v877_v34 = vpop.permute.xlu2 %876 }
 0xc4c   :  { %v1856_v20 = vadd.f32 %v877_v34, %v869_v28 }
 0xc4e   :  { %1466 = vtanh.f32 %v1856_v20 }
 0xc54   :  { %v1467_v37 = vpop.eup %1466 }
 0xc55   :  { %882 = vrot.lane.b32.xlu1 %v1467_v37, %s1594_s21 }
 0xc95   :  { %v818_v21 = vpop.permute.xlu0 %817 }
 0xc96   :  { %v1861_v40 = vadd.f32 %v818_v21, %v810_v38 }
 0xc98   :  { %1468 = vtanh.f32 %v1861_v40 }
 0xc9e   :  { %v1469_v30 = vpop.eup %1468 }
 0xc9f   :  { %823 = vrot.lane.b32.xlu2 %v1469_v30, %s1594_s21 }
 0xcc7   :  { %v883_v31 = vpop.permute.xlu1 %882 }
 0xcc8   :  { %v885_v35 = vmul.f32 %v883_v31, %v866_v6 }
 0xcca   :  { %v886_v41 = vpack.c.bf16 %v885_v35, %v885_v35 }
 0xccc   :  { %888 = vrot.lane.b32.xlu0 %v886_v41, %s1591_s13 }
 0xcf9   :  { %v824_v43 = vpop.permute.xlu2 %823 }
 0xcfa   :  { %v826_v36 = vmul.f32 %v824_v43, %v807_v23 }
 0xcfc   :  { %v827_v44 = vpack.c.bf16 %v826_v36, %v826_v36  ;;  %v143_v36 = vadd.f32 %v1873_v47, %v1847_v50 }
 0xcfe   :  { %829 = vrot.lane.b32.xlu1 %v827_v44, %s1591_s13 }
 0xd3e   :  { %v889_v45 = vpop.permute.xlu0 %888 }
 0xd3f   :  { %1339 = vmatmul.msk.bf16.vlgmr.msra.gmra.mxu3 %vm218_vm5, %v889_v45  ;;  %1340 = vmatmul.msk.bf16.vlgmr.msra.gmra.mxu0 %vm218_vm5, %v889_v45 }
 0xd70   :  { %v830_v39 = vpop.permute.xlu1 %829 }
 0xd71   :  { %1337 = vmatmul.msk.bf16.vlgmr.msra.gmra.mxu2 %vm218_vm5, %v830_v39 }
 0xdbc   :  { %v915_v46 = vpop.f32.mrf.mxu0 }
 0xdbd   :  { %v919_v27 = vadd.f32 %v1722_v42, %v915_v46 }
 0xdc2   :  { %v902_v51 = vpop.f32.mrf.mxu3 }
 0xdc3   :  { %v979_v52 = vadd.f32 %v902_v51, %v141_v48 }
 0xdc4   :  { %v917_v26 = vpop.f32.mrf.mxu0 }
 0xdc5   :  { %1470 = vtanh.f32 %v979_v52  ;;  %v1343_v56 = vmul.f32 -1.442695, %v979_v52  ;;  %v1903_v52 = vld [vmem:[%s1933_s4] ss:$0 sm:$0xff] }
 0xdca   :  { %v904_v53 = vpop.f32.mrf.mxu3 }
 0xdcb   :  { %v1471_v54 = vpop.eup %1470 }
 0xdcc   :  { %1002 = vrot.lane.b32.xlu2 %v1471_v54, %s1594_s21 }
 0xdf4   :  { %v843_v55 = vpop.f32.mrf.mxu2 }
 0xdf5   :  { %v920_v29 = vadd.f32 %v919_v27, %v843_v55 }
 0xdf7   :  { %1472 = vtanh.f32 %v920_v29  ;;  %v1341_v4 = vmul.f32 -1.442695, %v920_v29 }
 0xdf8   :  { %1474 = vpow2.f32 %v1343_v56 }
 0xdfc   :  { %v845_v33 = vpop.f32.mrf.mxu2 }
 0xdfd   :  { %v1473_v25 = vpop.eup %1472 }
 0xdfe   :  { %943 = vrot.lane.b32.xlu0 %v1473_v25, %s1594_s21  ;;  %v1475_v49 = vpop.eup %1474 }
 0xdff   :  { %v983_v57 = vadd.f32 1.0, %v1475_v49 }
 0xe01   :  { %1476 = vrcp.f32 %v983_v57  ;;  %v995_v61 = vand.u32 2147483648, %v983_v57  ;;  %vm989_vm3 = vweird.f32 %v983_v57  ;;  %v993_v42 = vand.u32 2147483647, %v983_v57 }
 0xe02   :  { %1478 = vpow2.f32 %v1341_v4 }
 0xe03   :  { %v996_v63 = vor.u32 1.1754944e-38, %v995_v61  ;;  %vm994_vm6 = vcmp.eq.f32.partialorder %v993_v42, 8.507059e+37 }
 0xe07   :  { %v1477_v32 = vpop.eup %1476 }
 0xe08   :  { %v985_v2 = vmul.f32 %v1477_v32, %v983_v57  ;;  %vm990_vm2 = vweird.f32 %v1477_v32  ;;  %v1479_v5 = vpop.eup %1478 }
 0xe09   :  { %vm991_vm4 = vmor %vm989_vm3, %vm990_vm2  ;;  %v924_v6 = vadd.f32 1.0, %v1479_v5 }
 0xe0a   :  { %v986_v58 = vsub.f32 1.0, %v985_v2 }
 0xe0b   :  { %1480 = vrcp.f32 %v924_v6  ;;  %v936_v12 = vand.u32 2147483648, %v924_v6  ;;  %vm930_vm8 = vweird.f32 %v924_v6  ;;  %v934_v13 = vand.u32 2147483647, %v924_v6 }
 0xe0c   :  { %v987_v59 = vmul.f32 %v1477_v32, %v986_v58 }
 0xe0d   :  { %v937_v15 = vor.u32 1.1754944e-38, %v936_v12  ;;  %vm935_vm0 = vcmp.eq.f32.partialorder %v934_v13, 8.507059e+37 }
 0xe0e   :  { %v988_v60 = vadd.f32 %v1477_v32, %v987_v59 }
 0xe10   :  { %v992_v62 = vsel %vm991_vm4, %v1477_v32, %v988_v60 }
 0xe11   :  { %v997_v0 = vsel %vm994_vm6, %v996_v63, %v992_v62  ;;  %v1481_v7 = vpop.eup %1480 }
 0xe12   :  { %v926_v8 = vmul.f32 %v1481_v7, %v924_v6  ;;  %vm931_vm7 = vweird.f32 %v1481_v7  ;;  %v1000_v19 = vmul.f32 %v997_v0, %v1856_v20 }
 0xe13   :  { %vm932_vm9 = vmor %vm930_vm8, %vm931_vm7 }
 0xe14   :  { %v927_v9 = vsub.f32 1.0, %v926_v8 }
 0xe16   :  { %v928_v10 = vmul.f32 %v1481_v7, %v927_v9 }
 0xe18   :  { %v929_v11 = vadd.f32 %v1481_v7, %v928_v10 }
 0xe1a   :  { %v933_v14 = vsel %vm932_vm9, %v1481_v7, %v929_v11 }
 0xe1b   :  { %v938_v17 = vsel %vm935_vm0, %v937_v15, %v933_v14 }
 0xe1c   :  { %v941_v28 = vmul.f32 %v938_v17, %v1861_v40 }
 0xe26   :  { %v1003_v1 = vpop.permute.xlu2 %1002 }
 0xe27   :  { %v1005_v3 = vmul.f32 %v1003_v1, %v997_v0 }
 0xe29   :  { %1007 = vrot.lane.b32.xlu1 %v1005_v3, %s1594_s21 }
 0xe70   :  { %v944_v16 = vpop.permute.xlu0 %943 }
 0xe71   :  { %v946_v18 = vmul.f32 %v944_v16, %v938_v17 }
 0xe73   :  { %948 = vrot.lane.b32.xlu2 %v946_v18, %s1594_s21 }
 0xe9b   :  { %v1008_v22 = vpop.permute.xlu1 %1007 }
 0xe9c   :  { %v1883_v23 = vadd.f32 %v1008_v22, %v1000_v19 }
 0xe9e   :  { %1482 = vtanh.f32 %v1883_v23 }
 0xea4   :  { %v1483_v24 = vpop.eup %1482 }
 0xea5   :  { %1013 = vrot.lane.b32.xlu0 %v1483_v24, %s1594_s21 }
 0xecd   :  { %v949_v34 = vpop.permute.xlu2 %948 }
 0xece   :  { %v1888_v37 = vadd.f32 %v949_v34, %v941_v28 }
 0xed0   :  { %1484 = vtanh.f32 %v1888_v37 }
 0xed6   :  { %v1485_v38 = vpop.eup %1484 }
 0xed7   :  { %954 = vrot.lane.b32.xlu1 %v1485_v38, %s1594_s21 }
 0xf17   :  { %v1014_v21 = vpop.permute.xlu0 %1013 }
 0xf18   :  { %v1016_v20 = vmul.f32 %v1014_v21, %v997_v0 }
 0xf1a   :  { %v1017_v30 = vpack.c.bf16 %v1016_v20, %v1016_v20 }
 0xf1c   :  { %1019 = vrot.lane.b32.xlu2 %v1017_v30, %s1591_s13 }
 0xf49   :  { %v955_v31 = vpop.permute.xlu1 %954 }
 0xf4a   :  { %v957_v35 = vmul.f32 %v955_v31, %v938_v17 }
 0xf4c   :  { %v958_v41 = vpack.c.bf16 %v957_v35, %v957_v35 }
 0xf4e   :  { %960 = vrot.lane.b32.xlu0 %v958_v41, %s1591_s13 }
 0xf76   :  { %v1020_v43 = vpop.permute.xlu2 %1019 }
 0xf77   :  { %1344 = vmatmul.msk.bf16.vlgmr.msrb.gmra.mxu2 %vm218_vm5, %v1020_v43  ;;  %1345 = vmatmul.msk.bf16.vlgmr.msrb.gmra.mxu3 %vm218_vm5, %v1020_v43 }
 0xfc0   :  { %v961_v40 = vpop.permute.xlu0 %960 }
 0xfc1   :  { %1342 = vmatmul.msk.bf16.vlgmr.msrb.gmra.mxu1 %vm218_vm5, %v961_v40 }
 0xffa   :  { %v1033_v44 = vpop.f32.mrf.mxu2  ;;  %v1046_v45 = vpop.f32.mrf.mxu3 }
 0xffb   :  { %v1110_v39 = vadd.f32 %v1033_v44, %v143_v36  ;;  %v1050_v26 = vadd.f32 %v1903_v52, %v1046_v45 }
 0xffd   :  { %1486 = vtanh.f32 %v1110_v39  ;;  %v1348_v27 = vmul.f32 -1.442695, %v1110_v39 }
0x1002   :  { %v1035_v46 = vpop.f32.mrf.mxu2  ;;  %v1048_v48 = vpop.f32.mrf.mxu3 }
0x1003   :  { %v1487_v51 = vpop.eup %1486 }
0x1004   :  { %1133 = vrot.lane.b32.xlu1 %v1487_v51, %s1594_s21 }
0x103e   :  { %v974_v53 = vpop.f32.mrf.mxu1 }
0x103f   :  { %v1051_v54 = vadd.f32 %v1050_v26, %v974_v53 }
0x1041   :  { %1488 = vtanh.f32 %v1051_v54  ;;  %v1346_v60 = vmul.f32 -1.442695, %v1051_v54 }
0x1042   :  { %1490 = vpow2.f32 %v1348_v27 }
0x1046   :  { %v976_v50 = vpop.f32.mrf.mxu1 }
0x1047   :  { %v1489_v47 = vpop.eup %1488 }
0x1048   :  { %1074 = vrot.lane.b32.xlu2 %v1489_v47, %s1594_s21  ;;  %v1491_v55 = vpop.eup %1490 }
0x1049   :  { %v1114_v29 = vadd.f32 1.0, %v1491_v55 }
0x104b   :  { %1492 = vrcp.f32 %v1114_v29  ;;  %v1126_v32 = vand.u32 2147483648, %v1114_v29  ;;  %vm1120_vm11 = vweird.f32 %v1114_v29  ;;  %v1124_v2 = vand.u32 2147483647, %v1114_v29 }
0x104c   :  { %1494 = vpow2.f32 %v1346_v60 }
0x104d   :  { %v1127_v59 = vor.u32 1.1754944e-38, %v1126_v32  ;;  %vm1125_vm13 = vcmp.eq.f32.partialorder %v1124_v2, 8.507059e+37  ;;  %v1372_v32 = vld [vmem:[#allocation6 + $0x8] sm:$0xff]  ;;  %v1371_v2 = vld [vmem:[#allocation6] sm:$0xff] }
0x104e   :  { %1239 = vmatpush.bf16.msra.mxu2 %v1372_v32 }
0x1051   :  { %v1493_v56 = vpop.eup %1492 }
0x1052   :  { %v1116_v33 = vmul.f32 %v1493_v56, %v1114_v29  ;;  %vm1121_vm10 = vweird.f32 %v1493_v56  ;;  %v1495_v63 = vpop.eup %1494  ;;  %1240 = vmatpush.bf16.msra.mxu2 %v1371_v2 }
0x1053   :  { %vm1122_vm12 = vmor %vm1120_vm11, %vm1121_vm10  ;;  %v1055_v0 = vadd.f32 1.0, %v1495_v63 }
0x1054   :  { %v1117_v25 = vsub.f32 1.0, %v1116_v33 }
0x1055   :  { %1496 = vrcp.f32 %v1055_v0  ;;  %v1067_v7 = vand.u32 2147483648, %v1055_v0  ;;  %vm1061_vm15 = vweird.f32 %v1055_v0  ;;  %v1065_v8 = vand.u32 2147483647, %v1055_v0 }
0x1056   :  { %v1118_v49 = vmul.f32 %v1493_v56, %v1117_v25 }
0x1057   :  { %v1068_v10 = vor.u32 1.1754944e-38, %v1067_v7  ;;  %vm1066_vm2 = vcmp.eq.f32.partialorder %v1065_v8, 8.507059e+37 }
0x1058   :  { %v1119_v57 = vadd.f32 %v1493_v56, %v1118_v49 }
0x105a   :  { %v1123_v58 = vsel %vm1122_vm12, %v1493_v56, %v1119_v57 }
0x105b   :  { %v1128_v42 = vsel %vm1125_vm13, %v1127_v59, %v1123_v58  ;;  %v1497_v1 = vpop.eup %1496 }
0x105c   :  { %v1057_v3 = vmul.f32 %v1497_v1, %v1055_v0  ;;  %vm1062_vm14 = vweird.f32 %v1497_v1  ;;  %v1131_v14 = vmul.f32 %v1128_v42, %v1883_v23 }
0x105d   :  { %vm1063_vm1 = vmor %vm1061_vm15, %vm1062_vm14 }
0x105e   :  { %v1058_v4 = vsub.f32 1.0, %v1057_v3 }
0x1060   :  { %v1059_v5 = vmul.f32 %v1497_v1, %v1058_v4 }
0x1062   :  { %v1060_v6 = vadd.f32 %v1497_v1, %v1059_v5 }
0x1064   :  { %v1064_v9 = vsel %vm1063_vm1, %v1497_v1, %v1060_v6 }
0x1065   :  { %v1069_v12 = vsel %vm1066_vm2, %v1068_v10, %v1064_v9 }
0x1066   :  { %v1072_v18 = vmul.f32 %v1069_v12, %v1888_v37 }
0x1076   :  { %v1134_v61 = vpop.permute.xlu1 %1133 }
0x1077   :  { %v1136_v62 = vmul.f32 %v1134_v61, %v1128_v42 }
0x1079   :  { %1138 = vrot.lane.b32.xlu0 %v1136_v62, %s1594_s21 }
0x10a2   :  { %v1075_v11 = vpop.permute.xlu2 %1074 }
0x10a3   :  { %v1077_v13 = vmul.f32 %v1075_v11, %v1069_v12 }
0x10a5   :  { %1079 = vrot.lane.b32.xlu1 %v1077_v13, %s1594_s21 }
0x10eb   :  { %v1139_v15 = vpop.permute.xlu0 %1138 }
0x10ec   :  { %v1141_v16 = vadd.f32 %v1139_v15, %v1131_v14 }
0x10ee   :  { %1498 = vtanh.f32 %v1141_v16 }
0x10f4   :  { %v1499_v17 = vpop.eup %1498 }
0x10f5   :  { %1144 = vrot.lane.b32.xlu2 %v1499_v17, %s1594_s21 }
0x1117   :  { %v1080_v19 = vpop.permute.xlu1 %1079 }
0x1118   :  { %v1082_v22 = vadd.f32 %v1080_v19, %v1072_v18 }
0x111a   :  { %1500 = vtanh.f32 %v1082_v22 }
0x1120   :  { %v1501_v24 = vpop.eup %1500 }
0x1121   :  { %1085 = vrot.lane.b32.xlu0 %v1501_v24, %s1594_s21 }
0x114f   :  { %v1145_v28 = vpop.permute.xlu2 %1144 }
0x1150   :  { %v1147_v34 = vmul.f32 %v1145_v28, %v1128_v42  ;;  %v1381_v42 = vld [vmem:[%s1936_s7] ss:$0 sm:$0xff] }
0x1152   :  { %v1148_v38 = vpack.c.bf16 %v1147_v34, %v1147_v34 }
0x1154   :  { %1150 = vrot.lane.b32.xlu1 %v1148_v38, %s1591_s13 }
0x1193   :  { %v1086_v23 = vpop.permute.xlu0 %1085 }
0x1194   :  { %v1088_v21 = vmul.f32 %v1086_v23, %v1069_v12 }
0x1196   :  { %v1089_v20 = vpack.c.bf16 %v1088_v21, %v1088_v21 }
0x1198   :  { %1091 = vrot.lane.b32.xlu2 %v1089_v20, %s1591_s13 }
0x11c6   :  { %v1151_v30 = vpop.permute.xlu1 %1150 }
0x11c7   :  { %1349 = vmatmul.msk.bf16.vlgmr.msra.gmra.mxu1 %vm218_vm5, %v1151_v30 }
0x11f2   :  { %v1092_v37 = vpop.permute.xlu2 %1091 }
0x11f3   :  { %1347 = vmatmul.msk.bf16.vlgmr.msrb.gmra.mxu0 %vm218_vm5, %v1092_v37 }
0x1244   :  { %v1164_v31 = vpop.f32.mrf.mxu1 }
0x1245   :  { %v1165_v41 = vadd.f32 %v1903_v52, %v1164_v31 }
0x124c   :  { %v1166_v35 = vpop.f32.mrf.mxu1 }
0x1270   :  { %v1105_v43 = vpop.f32.mrf.mxu0 }
0x1271   :  { %v1168_v40 = vadd.f32 %v1165_v41, %v1105_v43 }
0x1273   :  { %1502 = vtanh.f32 %v1168_v40  ;;  %v1350_v45 = vmul.f32 -1.442695, %v1168_v40 }
0x1275   :  { %1504 = vpow2.f32 %v1350_v45 }
0x1278   :  { %v1107_v36 = vpop.f32.mrf.mxu0 }
0x1279   :  { %v1503_v44 = vpop.eup %1502 }
0x127a   :  { %1191 = vrot.lane.b32.xlu0 %v1503_v44, %s1594_s21 }
0x127b   :  { %v1505_v39 = vpop.eup %1504 }
0x127c   :  { %v1172_v46 = vadd.f32 1.0, %v1505_v39 }
0x127e   :  { %1506 = vrcp.f32 %v1172_v46  ;;  %v1184_v50 = vand.u32 2147483648, %v1172_v46  ;;  %vm1178_vm4 = vweird.f32 %v1172_v46  ;;  %v1182_v52 = vand.u32 2147483647, %v1172_v46 }
0x1280   :  { %v1185_v27 = vor.u32 1.1754944e-38, %v1184_v50  ;;  %vm1183_vm7 = vcmp.eq.f32.partialorder %v1182_v52, 8.507059e+37 }
0x1284   :  { %v1507_v48 = vpop.eup %1506 }
0x1285   :  { %v1174_v51 = vmul.f32 %v1507_v48, %v1172_v46  ;;  %vm1179_vm3 = vweird.f32 %v1507_v48 }
0x1286   :  { %vm1180_vm6 = vmor %vm1178_vm4, %vm1179_vm3 }
0x1287   :  { %v1175_v26 = vsub.f32 1.0, %v1174_v51 }
0x1289   :  { %v1176_v53 = vmul.f32 %v1507_v48, %v1175_v26 }
0x128b   :  { %v1177_v54 = vadd.f32 %v1507_v48, %v1176_v53 }
0x128d   :  { %v1181_v47 = vsel %vm1180_vm6, %v1507_v48, %v1177_v54 }
0x128e   :  { %v1186_v29 = vsel %vm1183_vm7, %v1185_v27, %v1181_v47 }
0x128f   :  { %v1189_v33 = vmul.f32 %v1186_v29, %v1082_v22 }
0x12ec   :  { %v1192_v55 = vpop.permute.xlu0 %1191 }
0x12ed   :  { %v1194_v56 = vmul.f32 %v1192_v55, %v1186_v29 }
0x12ef   :  { %1196 = vrot.lane.b32.xlu1 %v1194_v56, %s1594_s21 }
0x1361   :  { %v1197_v25 = vpop.permute.xlu1 %1196 }
0x1362   :  { %v1199_v49 = vadd.f32 %v1197_v25, %v1189_v33 }
0x1364   :  { %1508 = vtanh.f32 %v1199_v49 }
0x136a   :  { %v1509_v57 = vpop.eup %1508 }
0x136b   :  { %1202 = vrot.lane.b32.xlu2 %v1509_v57, %s1594_s21 }
0x13c5   :  { %v1203_v58 = vpop.permute.xlu2 %1202 }
0x13c6   :  { %v1205_v59 = vmul.f32 %v1203_v58, %v1186_v29 }
0x13c8   :  { %v1206_v60 = vpack.c.bf16 %v1205_v59, %v1205_v59 }
0x13ca   :  { %1216 = vrot.lane.b32.xlu0 %v1206_v60, %s1591_s13 }
0x143c   :  { %v1217_v61 = vpop.permute.xlu0 %1216 }
0x143d   :  { %1359 = vmatmul.msk.bf16.vlgmr.msra.gmra.mxu2 %vm218_vm5, %v1217_v61 }
0x14c0   :  { %v1242_v62 = vpop.f32.mrf.mxu2 }
0x14c1   :  { %v1243_v63 = vadd.f32 %v1381_v42, %v1242_v62 }
0x14c3   :  { %1246 = vst [vmem:[#allocation8] sm:$0xff] %v1243_v63 }
0x14c4   :  { %1257 = dma.vmem_to_hbm [thread:$0]  %s1253_s25, 128, %s1255_s27, [#allocation5]  }
0x14c8   :  { %v1244_v0 = vpop.f32.mrf.mxu2 }
0x14c9   :  { %1588 = dma.done.wait [#allocation5], 128  }
0x14ca   :  { %1589 = vsyncadd [#allocation5], 4294967168 }
0x14cb   :  { %1262 = vsyncpa [#allocation4], 1 }
0x14cc   :  { %1263 = vsyncpa [#allocation7], 1 }
0x14cd   :  { %1264 = vsyncpa [#allocation5], 1 }

</bundles_post_ra>
